<compile_context>
chip_gen: v6e
topology: v6e:2x2x1
jax: 0.10.0
libtpu: 0.0.40
codegen_flags: <defaults>
</compile_context>

<pallas_src>
import math
import functools

import jax
import jax.numpy as jnp
from jax.experimental import pallas as pl
from jax.experimental.pallas import tpu as pltpu


def cross_attn_block_kernel(seq_ref, cond_ref,
                            wq_ref, bq_ref, wkv_ref, bkv_ref,
                            wo_ref, bo_ref, gamma_ref, beta_ref,
                            out_ref, kv_ref, y_ref, *, num_heads, head_dim):
    """One grid step = one (batch element, query tile).

    seq_ref : (bs, D)       query rows for this tile (batch dim squeezed)
    cond_ref: (T, D)        full key/value source for this batch element
    wq_ref  : (D, D)        fused, lane-dense query weights
    bq_ref  : (1, D)  f32
    wkv_ref : (D, 2D)       fused K|V weights
    bkv_ref : (1, 2D) f32
    wo_ref  : (D, D)        output-projection weights
    bo_ref, gamma_ref, beta_ref : (1, D) f32
    kv_ref  : (T, 2D) VMEM scratch, activation dtype — carried K|V projection
    y_ref   : (bs, D) VMEM scratch, activation dtype — stacked per-head y
    """
    D = num_heads * head_dim
    scale = 1.0 / math.sqrt(head_dim)

    # K/V projection only at the first query tile of each batch element; the
    # carried kv_ref scratch is reused by the remaining S//block_s - 1 tiles
    # (legal because the sb grid axis is "arbitrary"/sequential).
    @pl.when(pl.program_id(1) == 0)
    def _():
        kv = (jnp.dot(cond_ref[...], wkv_ref[...],
                      preferred_element_type=jnp.float32) + bkv_ref[...])
        kv_ref[...] = kv.astype(kv_ref.dtype)            # (T, 2D)

    seq = seq_ref[...]                                    # (bs, D) activation dtype

    # Full-width lane-dense Q projection; 1/sqrt(hd) folded into q.  Cast back
    # to the activation dtype so the score matmul uses the fast MXU path.
    q_all = ((jnp.dot(seq, wq_ref[...], preferred_element_type=jnp.float32)
              + bq_ref[...]) * scale).astype(seq.dtype)   # (bs, D)

    # Per-head score / PV matmuls via static lane slices.  H is a small
    # compile-time constant; for large H chunk heads instead of fully
    # unrolling to bound live score slabs.
    for h in range(num_heads):
        lo = h * head_dim
        qh = q_all[:, lo:lo + head_dim]                   # (bs, hd)
        kh = kv_ref[:, lo:lo + head_dim]                  # (T, hd)  activation dtype
        vh = kv_ref[:, D + lo:D + lo + head_dim]          # (T, hd)  activation dtype

        # q @ k^T with the transpose folded into the contraction dims.
        s = jax.lax.dot_general(qh, kh, (((1,), (1,)), ((), ())),
                                preferred_element_type=jnp.float32)   # (bs, T)
        # (the reference's +1e-10 is a softmax shift-invariance no-op: dropped)
        s = s - jnp.max(s, axis=-1, keepdims=True)
        p = jnp.exp(s)
        denom = jnp.sum(p, axis=-1, keepdims=True)        # (bs, 1)

        # Normalization deferred past the PV matmul: scale the (bs, hd) result
        # instead of the (bs, T) probabilities; reciprocal runs on the EUP.
        y = jnp.dot(p.astype(kv_ref.dtype), vh,
                    preferred_element_type=jnp.float32)   # (bs, hd)
        y = y * pl.reciprocal(denom, approx=True)
        y_ref[:, lo:lo + head_dim] = y.astype(y_ref.dtype)

    # One fused, lane-dense output projection over all heads.
    attn = (jnp.dot(y_ref[...], wo_ref[...],
                    preferred_element_type=jnp.float32) + bo_ref[...])  # (bs, D) f32

    # TODO(synk): training-mode dropout (stochastic masking) not implemented;
    # both Dropout layers run as identity (eval/inference mode).
    resid = seq.astype(jnp.float32) + attn

    # LayerNorm over the feature dim (eps=1e-5, biased variance, affine) — f32.
    mean = jnp.mean(resid, axis=-1, keepdims=True)
    var = jnp.mean((resid - mean) ** 2, axis=-1, keepdims=True)
    normed = (resid - mean) * jax.lax.rsqrt(var + 1e-5)
    out_ref[...] = (normed * gamma_ref[...] + beta_ref[...]).astype(out_ref.dtype)


def cross_attention_block(seq, cond, params, num_heads, *, block_s=None):
    """seq: (N, S, D), cond: (N, T, D).
    params = (wq, bq, wk, bk, wv, bv, wo, bo, gamma, beta); linear weights are
    pre-transposed to (D_in, D_out)."""
    N, S, D = seq.shape
    _, T, _ = cond.shape
    H = num_heads
    hd = D // H
    assert H * hd == D
    wq, bq, wk, bk, wv, bv, wo, bo, gamma, beta = params

    act_dtype = seq.dtype
    # --- one-time (wrapper-side, plain XLA) weight re-layouts ----------------
    # Lane-dense fused weights in the activation dtype (bf16 MXU path when the
    # activations are bf16); biases / LN params stay f32 for the f32 epilogue.
    wq_r = wq.astype(act_dtype)                                  # (D, D)
    wkv_r = jnp.concatenate([wk, wv], axis=1).astype(act_dtype)  # (D, 2D) fused K|V
    wo_r = wo.astype(act_dtype)                                  # (D, D)
    bq_r = bq.reshape(1, D).astype(jnp.float32)
    bkv_r = jnp.concatenate([bk, bv]).reshape(1, 2 * D).astype(jnp.float32)
    row = lambda x: x.reshape(1, D).astype(jnp.float32)

    # Query tile along S: bounds the per-step VMEM working set.  Tune per chip
    # (256-512 on v7x / 64 MiB VMEM, up to ~1024 on v5e/v6e / 128 MiB).
    if block_s is None:
        block_s = next((c for c in (512, 256, 128) if S % c == 0), None)
        if block_s is None:
            # TODO(synk): pad S to a multiple of 256/512 in the caller for
            # long, non-divisible sequences instead of taking the whole S.
            assert S <= 512, "pad S to a multiple of 256/512 for long sequences"
            block_s = S
    assert S % block_s == 0

    kernel = functools.partial(cross_attn_block_kernel, num_heads=H, head_dim=hd)

    # Constant-index weight/bias/LN specs: DMA'd once across the grid and
    # single-buffered (their blocks never change so no pipelining is lost),
    # halving their VMEM footprint vs the default double-buffering.
    const = lambda shape: pl.BlockSpec(shape, lambda n, sb: (0,) * len(shape),
                                       pipeline_mode=pl.Buffered(1))

    return pl.pallas_call(
        kernel,
        out_shape=jax.ShapeDtypeStruct((N, S, D), seq.dtype),
        grid_spec=pltpu.PrefetchScalarGridSpec(
            num_scalar_prefetch=0,
            grid=(N, S // block_s),
            in_specs=[
                pl.BlockSpec((None, block_s, D), lambda n, sb: (n, sb, 0)),  # seq tile
                pl.BlockSpec((None, T, D), lambda n, sb: (n, 0, 0)),         # cond
                const((D, D)),        # Wq (fused, lane-dense)
                const((1, D)),        # bq
                const((D, 2 * D)),    # Wkv (fused K|V)
                const((1, 2 * D)),    # bkv
                const((D, D)),        # Wo
                const((1, D)),        # bo
                const((1, D)),        # LayerNorm gamma
                const((1, D)),        # LayerNorm beta
            ],
            out_specs=pl.BlockSpec((None, block_s, D), lambda n, sb: (n, sb, 0)),
            scratch_shapes=[
                pltpu.VMEM((T, 2 * D), act_dtype),     # carried K|V projection
                pltpu.VMEM((block_s, D), act_dtype),   # stacked per-head y
            ],
        ),
        compiler_params=pltpu.CompilerParams(
            # sb is "arbitrary" (sequential) so the carried KV scratch is
            # legal; n stays "parallel" for megacore sharding over batch.
            dimension_semantics=("parallel", "arbitrary"),
            vmem_limit_bytes=48 * 1024 * 1024,  # fits v7x's 64 MiB; raise on v5e/v6e
        ),
    )(seq, cond, wq_r, bq_r, wkv_r, bkv_r, wo_r, row(bo), row(gamma), row(beta))


def _reference(seq, cond, params, num_heads):
    """Pure-JAX reference mirroring the PyTorch forward (eval mode)."""
    wq, bq, wk, bk, wv, bv, wo, bo, gamma, beta = params
    N, S, D = seq.shape
    _, T, _ = cond.shape
    H, hd = num_heads, D // num_heads
    q = (seq @ wq + bq).reshape(N, S, H, hd).transpose(0, 2, 1, 3)
    k = (cond @ wk + bk).reshape(N, T, H, hd).transpose(0, 2, 1, 3)
    v = (cond @ wv + bv).reshape(N, T, H, hd).transpose(0, 2, 1, 3)
    s = jnp.einsum('nhsd,nhtd->nhst', q, k) / math.sqrt(hd)
    p = jax.nn.softmax(s + 1e-10, axis=3)
    y = jnp.einsum('nhst,nhtd->nhsd', p, v).transpose(0, 2, 1, 3).reshape(N, S, D)
    x = y @ wo + bo
    r = seq + x
    mean = jnp.mean(r, axis=-1, keepdims=True)
    var = jnp.mean((r - mean) ** 2, axis=-1, keepdims=True)
    return (r - mean) / jnp.sqrt(var + 1e-5) * gamma + beta


if __name__ == "__main__":
    # Small shapes; D is a multiple of 128 so the output stores are lane-dense.
    N, S, T, D, H = 2, 16, 32, 128, 4

    key = jax.random.PRNGKey(0)
    ks = jax.random.split(key, 12)
    bound = 1.0 / math.sqrt(D)
    u = lambda k, shape: jax.random.uniform(k, shape, jnp.float32, -bound, bound)

    # Linear weights stored pre-transposed as (D_in, D_out); LayerNorm affine.
    params = (
        u(ks[0], (D, D)), u(ks[1], (D,)),   # query_proj
        u(ks[2], (D, D)), u(ks[3], (D,)),   # key_proj
        u(ks[4], (D, D)), u(ks[5], (D,)),   # value_proj
        u(ks[6], (D, D)), u(ks[7], (D,)),   # head_proj
        1.0 + 0.1 * jax.random.normal(ks[10], (D,), jnp.float32),  # LN weight
        0.1 * jax.random.normal(ks[11], (D,), jnp.float32),        # LN bias
    )

    seq = jax.random.normal(ks[8], (N, S, D), jnp.float32)
    cond = jax.random.normal(ks[9], (N, T, D), jnp.float32)

    out = cross_attention_block(seq, cond, params, num_heads=H)
    out = jax.block_until_ready(out)

    ref = _reference(seq, cond, params, num_heads=H)
    assert out.shape == (N, S, D)
    # Tolerance slack covers the EUP approximate reciprocal used to normalize
    # the attention output; with approx=False the kernel matches to ~1e-5.
    err = float(jnp.max(jnp.abs(out - ref)))
    assert err < 5e-3, f"mismatch vs JAX reference: max abs err = {err}"

    print("KERNEL_OK")
</pallas_src>

<mosaic_0001>
module attributes {stable_mosaic.version = 11 : i64} {
  func.func @cross_attn_block_kernel(%arg0: i32, %arg1: i32, %arg2: memref<1x16x128xf32, #tpu.memory_space<vmem>>, %arg3: memref<1x32x128xf32, #tpu.memory_space<vmem>>, %arg4: memref<128x128xf32, #tpu.memory_space<vmem>>, %arg5: memref<1x128xf32, #tpu.memory_space<vmem>>, %arg6: memref<128x256xf32, #tpu.memory_space<vmem>>, %arg7: memref<1x256xf32, #tpu.memory_space<vmem>>, %arg8: memref<128x128xf32, #tpu.memory_space<vmem>>, %arg9: memref<1x128xf32, #tpu.memory_space<vmem>>, %arg10: memref<1x128xf32, #tpu.memory_space<vmem>>, %arg11: memref<1x128xf32, #tpu.memory_space<vmem>>, %arg12: memref<1x16x128xf32, #tpu.memory_space<vmem>>, %arg13: memref<32x256xf32, #tpu.memory_space<vmem>>, %arg14: memref<16x128xf32, #tpu.memory_space<vmem>>) attributes {dimension_semantics = [#tpu.dimension_semantics<parallel>, #tpu.dimension_semantics<arbitrary>], iteration_bounds = array<i64: 2, 1>, scalar_prefetch = 0 : i64, scratch_operands = 2 : i64, tpu.core_type = #tpu.core_type<tc>, window_params = [{transform_indices = @transform_0, window_bounds = array<i64: 1, 16, 128>}, {transform_indices = @transform_1, window_bounds = array<i64: 1, 32, 128>}, {pipeline_mode = #tpu.pipeline_mode<synchronous>, transform_indices = @transform_2, window_bounds = array<i64: 128, 128>}, {pipeline_mode = #tpu.pipeline_mode<synchronous>, transform_indices = @transform_3, window_bounds = array<i64: 1, 128>}, {pipeline_mode = #tpu.pipeline_mode<synchronous>, transform_indices = @transform_4, window_bounds = array<i64: 128, 256>}, {pipeline_mode = #tpu.pipeline_mode<synchronous>, transform_indices = @transform_5, window_bounds = array<i64: 1, 256>}, {pipeline_mode = #tpu.pipeline_mode<synchronous>, transform_indices = @transform_6, window_bounds = array<i64: 128, 128>}, {pipeline_mode = #tpu.pipeline_mode<synchronous>, transform_indices = @transform_7, window_bounds = array<i64: 1, 128>}, {pipeline_mode = #tpu.pipeline_mode<synchronous>, transform_indices = @transform_8, window_bounds = array<i64: 1, 128>}, {pipeline_mode = #tpu.pipeline_mode<synchronous>, transform_indices = @transform_9, window_bounds = array<i64: 1, 128>}, {transform_indices = @transform_10, window_bounds = array<i64: 1, 16, 128>}]} {
    %c0_i32 = arith.constant 0 : i32
    %0 = arith.cmpi eq, %arg1, %c0_i32 : i32
    %1 = arith.extui %0 : i1 to i32
    %c0_i32_0 = arith.constant 0 : i32
    %2 = arith.cmpi ne, %1, %c0_i32_0 : i32
    scf.if %2 {
      %c0_60 = arith.constant 0 : index
      %c0_61 = arith.constant 0 : index
      %c0_62 = arith.constant 0 : index
      %110 = vector.load %arg3[%c0_60, %c0_61, %c0_62] : memref<1x32x128xf32, #tpu.memory_space<vmem>>, vector<1x32x128xf32>
      %111 = vector.shape_cast %110 : vector<1x32x128xf32> to vector<32x128xf32>
      %c0_63 = arith.constant 0 : index
      %c0_64 = arith.constant 0 : index
      %112 = vector.load %arg6[%c0_63, %c0_64] : memref<128x256xf32, #tpu.memory_space<vmem>>, vector<128x256xf32>
      %cst_65 = arith.constant dense<0.000000e+00> : vector<32x256xf32>
      %113 = tpu.matmul %111, %112, %cst_65 {dimension_numbers = #tpu.dot_dimension_numbers<[1], [0], [0], [1], [0, 0, 1, 1], [], []>} : vector<32x128xf32>, vector<128x256xf32>, vector<32x256xf32> -> vector<32x256xf32>
      %c0_66 = arith.constant 0 : index
      %c0_67 = arith.constant 0 : index
      %114 = vector.load %arg7[%c0_66, %c0_67] : memref<1x256xf32, #tpu.memory_space<vmem>>, vector<1x256xf32>
      %115 = vector.broadcast %114 : vector<1x256xf32> to vector<32x256xf32>
      %116 = arith.addf %113, %115 : vector<32x256xf32>
      %c0_68 = arith.constant 0 : index
      %c0_69 = arith.constant 0 : index
      %117 = vector.load %arg13[%c0_68, %c0_69] : memref<32x256xf32, #tpu.memory_space<vmem>>, vector<32x256xf32>
      tpu.vector_store %arg13[%c0_68, %c0_69], %116 {strides = array<i32>} : memref<32x256xf32, #tpu.memory_space<vmem>>, vector<32x256xf32>,
    } else {
    }
    %c0 = arith.constant 0 : index
    %c0_1 = arith.constant 0 : index
    %c0_2 = arith.constant 0 : index
    %3 = vector.load %arg2[%c0, %c0_1, %c0_2] : memref<1x16x128xf32, #tpu.memory_space<vmem>>, vector<1x16x128xf32>
    %4 = vector.shape_cast %3 : vector<1x16x128xf32> to vector<16x128xf32>
    %c0_3 = arith.constant 0 : index
    %c0_4 = arith.constant 0 : index
    %5 = vector.load %arg4[%c0_3, %c0_4] : memref<128x128xf32, #tpu.memory_space<vmem>>, vector<128x128xf32>
    %cst = arith.constant dense<0.000000e+00> : vector<16x128xf32>
    %6 = tpu.matmul %4, %5, %cst {dimension_numbers = #tpu.dot_dimension_numbers<[1], [0], [0], [1], [0, 0, 1, 1], [], []>} : vector<16x128xf32>, vector<128x128xf32>, vector<16x128xf32> -> vector<16x128xf32>
    %c0_5 = arith.constant 0 : index
    %c0_6 = arith.constant 0 : index
    %7 = vector.load %arg5[%c0_5, %c0_6] : memref<1x128xf32, #tpu.memory_space<vmem>>, vector<1x128xf32>
    %8 = vector.broadcast %7 : vector<1x128xf32> to vector<16x128xf32>
    %9 = arith.addf %6, %8 : vector<16x128xf32>
    %cst_7 = arith.constant 0.176776692 : f32
    %10 = vector.broadcast %cst_7 : f32 to vector<16x128xf32>
    %11 = arith.mulf %9, %10 : vector<16x128xf32>
    %12 = vector.extract_strided_slice %11 {offsets = [0, 0], sizes = [16, 32], strides = [1, 1]} : vector<16x128xf32> to vector<16x32xf32>
    %c0_8 = arith.constant 0 : index
    %c0_9 = arith.constant 0 : index
    %13 = vector.load %arg13[%c0_8, %c0_9] : memref<32x256xf32, #tpu.memory_space<vmem>>, vector<32x32xf32>
    %c0_10 = arith.constant 0 : index
    %c128 = arith.constant 128 : index
    %14 = vector.load %arg13[%c0_10, %c128] : memref<32x256xf32, #tpu.memory_space<vmem>>, vector<32x32xf32>
    %cst_11 = arith.constant dense<0.000000e+00> : vector<16x32xf32>
    %15 = tpu.matmul %12, %13, %cst_11 {dimension_numbers = #tpu.dot_dimension_numbers<[1], [1], [0], [0], [0, 0, 1, 0], [], []>} : vector<16x32xf32>, vector<32x32xf32>, vector<16x32xf32> -> vector<16x32xf32>
    %cst_12 = arith.constant dense<0xFF800000> : vector<16xf32>
    %16 = vector.multi_reduction <maximumf>, %15, %cst_12 [1] : vector<16x32xf32> to vector<16xf32>
    %17 = vector.shape_cast %16 : vector<16xf32> to vector<16x1xf32>
    %18 = vector.broadcast %17 : vector<16x1xf32> to vector<16x32xf32>
    %19 = arith.subf %15, %18 : vector<16x32xf32>
    %20 = math.exp %19 : vector<16x32xf32>
    %cst_13 = arith.constant dense<0.000000e+00> : vector<16xf32>
    %21 = vector.multi_reduction <add>, %20, %cst_13 [1] : vector<16x32xf32> to vector<16xf32>
    %22 = vector.shape_cast %21 : vector<16xf32> to vector<16x1xf32>
    %cst_14 = arith.constant dense<0.000000e+00> : vector<16x32xf32>
    %23 = tpu.matmul %20, %14, %cst_14 {dimension_numbers = #tpu.dot_dimension_numbers<[1], [0], [0], [1], [0, 0, 1, 1], [], []>} : vector<16x32xf32>, vector<32x32xf32>, vector<16x32xf32> -> vector<16x32xf32>
    %24 = tpu.reciprocal %22 {approx = true} : vector<16x1xf32> -> vector<16x1xf32>
    %25 = vector.broadcast %24 : vector<16x1xf32> to vector<16x32xf32>
    %26 = arith.mulf %23, %25 : vector<16x32xf32>
    %c0_15 = arith.constant 0 : index
    %c0_16 = arith.constant 0 : index
    %27 = vector.load %arg14[%c0_15, %c0_16] : memref<16x128xf32, #tpu.memory_space<vmem>>, vector<16x32xf32>
    tpu.vector_store %arg14[%c0_15, %c0_16], %26 {strides = array<i32>} : memref<16x128xf32, #tpu.memory_space<vmem>>, vector<16x32xf32>,
    %28 = vector.extract_strided_slice %11 {offsets = [0, 32], sizes = [16, 32], strides = [1, 1]} : vector<16x128xf32> to vector<16x32xf32>
    %c0_17 = arith.constant 0 : index
    %c32 = arith.constant 32 : index
    %29 = vector.load %arg13[%c0_17, %c32] : memref<32x256xf32, #tpu.memory_space<vmem>>, vector<32x32xf32>
    %c0_18 = arith.constant 0 : index
    %c160 = arith.constant 160 : index
    %30 = vector.load %arg13[%c0_18, %c160] : memref<32x256xf32, #tpu.memory_space<vmem>>, vector<32x32xf32>
    %cst_19 = arith.constant dense<0.000000e+00> : vector<16x32xf32>
    %31 = tpu.matmul %28, %29, %cst_19 {dimension_numbers = #tpu.dot_dimension_numbers<[1], [1], [0], [0], [0, 0, 1, 0], [], []>} : vector<16x32xf32>, vector<32x32xf32>, vector<16x32xf32> -> vector<16x32xf32>
    %cst_20 = arith.constant dense<0xFF800000> : vector<16xf32>
    %32 = vector.multi_reduction <maximumf>, %31, %cst_20 [1] : vector<16x32xf32> to vector<16xf32>
    %33 = vector.shape_cast %32 : vector<16xf32> to vector<16x1xf32>
    %34 = vector.broadcast %33 : vector<16x1xf32> to vector<16x32xf32>
    %35 = arith.subf %31, %34 : vector<16x32xf32>
    %36 = math.exp %35 : vector<16x32xf32>
    %cst_21 = arith.constant dense<0.000000e+00> : vector<16xf32>
    %37 = vector.multi_reduction <add>, %36, %cst_21 [1] : vector<16x32xf32> to vector<16xf32>
    %38 = vector.shape_cast %37 : vector<16xf32> to vector<16x1xf32>
    %cst_22 = arith.constant dense<0.000000e+00> : vector<16x32xf32>
    %39 = tpu.matmul %36, %30, %cst_22 {dimension_numbers = #tpu.dot_dimension_numbers<[1], [0], [0], [1], [0, 0, 1, 1], [], []>} : vector<16x32xf32>, vector<32x32xf32>, vector<16x32xf32> -> vector<16x32xf32>
    %40 = tpu.reciprocal %38 {approx = true} : vector<16x1xf32> -> vector<16x1xf32>
    %41 = vector.broadcast %40 : vector<16x1xf32> to vector<16x32xf32>
    %42 = arith.mulf %39, %41 : vector<16x32xf32>
    %c0_23 = arith.constant 0 : index
    %c32_24 = arith.constant 32 : index
    %43 = vector.load %arg14[%c0_23, %c32_24] : memref<16x128xf32, #tpu.memory_space<vmem>>, vector<16x32xf32>
    tpu.vector_store %arg14[%c0_23, %c32_24], %42 {strides = array<i32>} : memref<16x128xf32, #tpu.memory_space<vmem>>, vector<16x32xf32>,
    %44 = vector.extract_strided_slice %11 {offsets = [0, 64], sizes = [16, 32], strides = [1, 1]} : vector<16x128xf32> to vector<16x32xf32>
    %c0_25 = arith.constant 0 : index
    %c64 = arith.constant 64 : index
    %45 = vector.load %arg13[%c0_25, %c64] : memref<32x256xf32, #tpu.memory_space<vmem>>, vector<32x32xf32>
    %c0_26 = arith.constant 0 : index
    %c192 = arith.constant 192 : index
    %46 = vector.load %arg13[%c0_26, %c192] : memref<32x256xf32, #tpu.memory_space<vmem>>, vector<32x32xf32>
    %cst_27 = arith.constant dense<0.000000e+00> : vector<16x32xf32>
    %47 = tpu.matmul %44, %45, %cst_27 {dimension_numbers = #tpu.dot_dimension_numbers<[1], [1], [0], [0], [0, 0, 1, 0], [], []>} : vector<16x32xf32>, vector<32x32xf32>, vector<16x32xf32> -> vector<16x32xf32>
    %cst_28 = arith.constant dense<0xFF800000> : vector<16xf32>
    %48 = vector.multi_reduction <maximumf>, %47, %cst_28 [1] : vector<16x32xf32> to vector<16xf32>
    %49 = vector.shape_cast %48 : vector<16xf32> to vector<16x1xf32>
    %50 = vector.broadcast %49 : vector<16x1xf32> to vector<16x32xf32>
    %51 = arith.subf %47, %50 : vector<16x32xf32>
    %52 = math.exp %51 : vector<16x32xf32>
    %cst_29 = arith.constant dense<0.000000e+00> : vector<16xf32>
    %53 = vector.multi_reduction <add>, %52, %cst_29 [1] : vector<16x32xf32> to vector<16xf32>
    %54 = vector.shape_cast %53 : vector<16xf32> to vector<16x1xf32>
    %cst_30 = arith.constant dense<0.000000e+00> : vector<16x32xf32>
    %55 = tpu.matmul %52, %46, %cst_30 {dimension_numbers = #tpu.dot_dimension_numbers<[1], [0], [0], [1], [0, 0, 1, 1], [], []>} : vector<16x32xf32>, vector<32x32xf32>, vector<16x32xf32> -> vector<16x32xf32>
    %56 = tpu.reciprocal %54 {approx = true} : vector<16x1xf32> -> vector<16x1xf32>
    %57 = vector.broadcast %56 : vector<16x1xf32> to vector<16x32xf32>
    %58 = arith.mulf %55, %57 : vector<16x32xf32>
    %c0_31 = arith.constant 0 : index
    %c64_32 = arith.constant 64 : index
    %59 = vector.load %arg14[%c0_31, %c64_32] : memref<16x128xf32, #tpu.memory_space<vmem>>, vector<16x32xf32>
    tpu.vector_store %arg14[%c0_31, %c64_32], %58 {strides = array<i32>} : memref<16x128xf32, #tpu.memory_space<vmem>>, vector<16x32xf32>,
    %60 = vector.extract_strided_slice %11 {offsets = [0, 96], sizes = [16, 32], strides = [1, 1]} : vector<16x128xf32> to vector<16x32xf32>
    %c0_33 = arith.constant 0 : index
    %c96 = arith.constant 96 : index
    %61 = vector.load %arg13[%c0_33, %c96] : memref<32x256xf32, #tpu.memory_space<vmem>>, vector<32x32xf32>
    %c0_34 = arith.constant 0 : index
    %c224 = arith.constant 224 : index
    %62 = vector.load %arg13[%c0_34, %c224] : memref<32x256xf32, #tpu.memory_space<vmem>>, vector<32x32xf32>
    %cst_35 = arith.constant dense<0.000000e+00> : vector<16x32xf32>
    %63 = tpu.matmul %60, %61, %cst_35 {dimension_numbers = #tpu.dot_dimension_numbers<[1], [1], [0], [0], [0, 0, 1, 0], [], []>} : vector<16x32xf32>, vector<32x32xf32>, vector<16x32xf32> -> vector<16x32xf32>
    %cst_36 = arith.constant dense<0xFF800000> : vector<16xf32>
    %64 = vector.multi_reduction <maximumf>, %63, %cst_36 [1] : vector<16x32xf32> to vector<16xf32>
    %65 = vector.shape_cast %64 : vector<16xf32> to vector<16x1xf32>
    %66 = vector.broadcast %65 : vector<16x1xf32> to vector<16x32xf32>
    %67 = arith.subf %63, %66 : vector<16x32xf32>
    %68 = math.exp %67 : vector<16x32xf32>
    %cst_37 = arith.constant dense<0.000000e+00> : vector<16xf32>
    %69 = vector.multi_reduction <add>, %68, %cst_37 [1] : vector<16x32xf32> to vector<16xf32>
    %70 = vector.shape_cast %69 : vector<16xf32> to vector<16x1xf32>
    %cst_38 = arith.constant dense<0.000000e+00> : vector<16x32xf32>
    %71 = tpu.matmul %68, %62, %cst_38 {dimension_numbers = #tpu.dot_dimension_numbers<[1], [0], [0], [1], [0, 0, 1, 1], [], []>} : vector<16x32xf32>, vector<32x32xf32>, vector<16x32xf32> -> vector<16x32xf32>
    %72 = tpu.reciprocal %70 {approx = true} : vector<16x1xf32> -> vector<16x1xf32>
    %73 = vector.broadcast %72 : vector<16x1xf32> to vector<16x32xf32>
    %74 = arith.mulf %71, %73 : vector<16x32xf32>
    %c0_39 = arith.constant 0 : index
    %c96_40 = arith.constant 96 : index
    %75 = vector.load %arg14[%c0_39, %c96_40] : memref<16x128xf32, #tpu.memory_space<vmem>>, vector<16x32xf32>
    tpu.vector_store %arg14[%c0_39, %c96_40], %74 {strides = array<i32>} : memref<16x128xf32, #tpu.memory_space<vmem>>, vector<16x32xf32>,
    %c0_41 = arith.constant 0 : index
    %c0_42 = arith.constant 0 : index
    %76 = vector.load %arg14[%c0_41, %c0_42] : memref<16x128xf32, #tpu.memory_space<vmem>>, vector<16x128xf32>
    %c0_43 = arith.constant 0 : index
    %c0_44 = arith.constant 0 : index
    %77 = vector.load %arg8[%c0_43, %c0_44] : memref<128x128xf32, #tpu.memory_space<vmem>>, vector<128x128xf32>
    %cst_45 = arith.constant dense<0.000000e+00> : vector<16x128xf32>
    %78 = tpu.matmul %76, %77, %cst_45 {dimension_numbers = #tpu.dot_dimension_numbers<[1], [0], [0], [1], [0, 0, 1, 1], [], []>} : vector<16x128xf32>, vector<128x128xf32>, vector<16x128xf32> -> vector<16x128xf32>
    %c0_46 = arith.constant 0 : index
    %c0_47 = arith.constant 0 : index
    %79 = vector.load %arg9[%c0_46, %c0_47] : memref<1x128xf32, #tpu.memory_space<vmem>>, vector<1x128xf32>
    %80 = vector.broadcast %79 : vector<1x128xf32> to vector<16x128xf32>
    %81 = arith.addf %78, %80 : vector<16x128xf32>
    %82 = arith.addf %4, %81 : vector<16x128xf32>
    %cst_48 = arith.constant dense<0.000000e+00> : vector<16xf32>
    %83 = vector.multi_reduction <add>, %82, %cst_48 [1] : vector<16x128xf32> to vector<16xf32>
    %84 = vector.shape_cast %83 : vector<16xf32> to vector<16x1xf32>
    %cst_49 = arith.constant 1.280000e+02 : f32
    %85 = vector.broadcast %cst_49 : f32 to vector<16x1xf32>
    %86 = arith.divf %84, %85 : vector<16x1xf32>
    %87 = vector.broadcast %86 : vector<16x1xf32> to vector<16x128xf32>
    %88 = arith.subf %82, %87 : vector<16x128xf32>
    %89 = arith.mulf %88, %88 : vector<16x128xf32>
    %cst_50 = arith.constant dense<0.000000e+00> : vector<16xf32>
    %90 = vector.multi_reduction <add>, %89, %cst_50 [1] : vector<16x128xf32> to vector<16xf32>
    %91 = vector.shape_cast %90 : vector<16xf32> to vector<16x1xf32>
    %cst_51 = arith.constant 1.280000e+02 : f32
    %92 = vector.broadcast %cst_51 : f32 to vector<16x1xf32>
    %93 = arith.divf %91, %92 : vector<16x1xf32>
    %94 = vector.broadcast %86 : vector<16x1xf32> to vector<16x128xf32>
    %95 = arith.subf %82, %94 : vector<16x128xf32>
    %cst_52 = arith.constant 9.99999974E-6 : f32
    %96 = vector.broadcast %cst_52 : f32 to vector<16x1xf32>
    %97 = arith.addf %93, %96 : vector<16x1xf32>
    %98 = math.rsqrt %97 : vector<16x1xf32>
    %99 = vector.broadcast %98 : vector<16x1xf32> to vector<16x128xf32>
    %100 = arith.mulf %95, %99 : vector<16x128xf32>
    %c0_53 = arith.constant 0 : index
    %c0_54 = arith.constant 0 : index
    %101 = vector.load %arg10[%c0_53, %c0_54] : memref<1x128xf32, #tpu.memory_space<vmem>>, vector<1x128xf32>
    %102 = vector.broadcast %101 : vector<1x128xf32> to vector<16x128xf32>
    %103 = arith.mulf %100, %102 : vector<16x128xf32>
    %c0_55 = arith.constant 0 : index
    %c0_56 = arith.constant 0 : index
    %104 = vector.load %arg11[%c0_55, %c0_56] : memref<1x128xf32, #tpu.memory_space<vmem>>, vector<1x128xf32>
    %105 = vector.broadcast %104 : vector<1x128xf32> to vector<16x128xf32>
    %106 = arith.addf %103, %105 : vector<16x128xf32>
    %c0_57 = arith.constant 0 : index
    %c0_58 = arith.constant 0 : index
    %c0_59 = arith.constant 0 : index
    %107 = vector.load %arg12[%c0_57, %c0_58, %c0_59] : memref<1x16x128xf32, #tpu.memory_space<vmem>>, vector<1x16x128xf32>
    %108 = vector.shape_cast %107 : vector<1x16x128xf32> to vector<16x128xf32>
    %109 = vector.shape_cast %106 : vector<16x128xf32> to vector<1x16x128xf32>
    tpu.vector_store %arg12[%c0_57, %c0_58, %c0_59], %109 {strides = array<i32>} : memref<1x16x128xf32, #tpu.memory_space<vmem>>, vector<1x16x128xf32>,
    return
  }
  func.func @transform_0(%arg0: i32, %arg1: i32) -> (i32, i32, i32) {
    %c0_i32 = arith.constant 0 : i32
    %c0_i32_0 = arith.constant 0 : i32
    return %arg0, %arg1, %c0_i32 : i32, i32, i32
  }
  func.func @transform_1(%arg0: i32, %arg1: i32) -> (i32, i32, i32) {
    %c0_i32 = arith.constant 0 : i32
    %c0_i32_0 = arith.constant 0 : i32
    %c0_i32_1 = arith.constant 0 : i32
    return %arg0, %c0_i32, %c0_i32_0 : i32, i32, i32
  }
  func.func @transform_2(%arg0: i32, %arg1: i32) -> (i32, i32) {
    %c0_i32 = arith.constant 0 : i32
    %c0_i32_0 = arith.constant 0 : i32
    %c0_i32_1 = arith.constant 0 : i32
    return %c0_i32, %c0_i32_0 : i32, i32
  }
  func.func @transform_3(%arg0: i32, %arg1: i32) -> (i32, i32) {
    %c0_i32 = arith.constant 0 : i32
    %c0_i32_0 = arith.constant 0 : i32
    %c0_i32_1 = arith.constant 0 : i32
    return %c0_i32, %c0_i32_0 : i32, i32
  }
  func.func @transform_4(%arg0: i32, %arg1: i32) -> (i32, i32) {
    %c0_i32 = arith.constant 0 : i32
    %c0_i32_0 = arith.constant 0 : i32
    %c0_i32_1 = arith.constant 0 : i32
    return %c0_i32, %c0_i32_0 : i32, i32
  }
  func.func @transform_5(%arg0: i32, %arg1: i32) -> (i32, i32) {
    %c0_i32 = arith.constant 0 : i32
    %c0_i32_0 = arith.constant 0 : i32
    %c0_i32_1 = arith.constant 0 : i32
    return %c0_i32, %c0_i32_0 : i32, i32
  }
  func.func @transform_6(%arg0: i32, %arg1: i32) -> (i32, i32) {
    %c0_i32 = arith.constant 0 : i32
    %c0_i32_0 = arith.constant 0 : i32
    %c0_i32_1 = arith.constant 0 : i32
    return %c0_i32, %c0_i32_0 : i32, i32
  }
  func.func @transform_7(%arg0: i32, %arg1: i32) -> (i32, i32) {
    %c0_i32 = arith.constant 0 : i32
    %c0_i32_0 = arith.constant 0 : i32
    %c0_i32_1 = arith.constant 0 : i32
    return %c0_i32, %c0_i32_0 : i32, i32
  }
  func.func @transform_8(%arg0: i32, %arg1: i32) -> (i32, i32) {
    %c0_i32 = arith.constant 0 : i32
    %c0_i32_0 = arith.constant 0 : i32
    %c0_i32_1 = arith.constant 0 : i32
    return %c0_i32, %c0_i32_0 : i32, i32
  }
  func.func @transform_9(%arg0: i32, %arg1: i32) -> (i32, i32) {
    %c0_i32 = arith.constant 0 : i32
    %c0_i32_0 = arith.constant 0 : i32
    %c0_i32_1 = arith.constant 0 : i32
    return %c0_i32, %c0_i32_0 : i32, i32
  }
  func.func @transform_10(%arg0: i32, %arg1: i32) -> (i32, i32, i32) {
    %c0_i32 = arith.constant 0 : i32
    %c0_i32_0 = arith.constant 0 : i32
    return %arg0, %arg1, %c0_i32 : i32, i32, i32
  }
}

</mosaic_0001>

<bundles_post_ra>
// kernel: tpu_custom_call.1
= control target key start
LH: loop header
LB: loop body
LE: loop exit
PB: predicated region body
PF: predicated region fallthrough
CT: control target
= control target key end

     0   :  { %s3182_s0 = inlined_call_operand.hbm [shape: f32[2,16,128], index: 0, kind: input, shape index: {}]   ;;  %s3183_s1 = inlined_call_operand.hbm [shape: f32[2,32,128], index: 1, kind: input, shape index: {}]   ;;  %s3184_s2 = inlined_call_operand.hbm [shape: f32[128,128], index: 2, kind: input, shape index: {}]   ;;  %s3185_s3 = inlined_call_operand.vmem [shape: f32[1,128], index: 3, kind: input, shape index: {}]   ;;  %s3186_s4 = inlined_call_operand.hbm [shape: f32[128,256], index: 4, kind: input, shape index: {}]   ;;  %s3187_s5 = inlined_call_operand.vmem [shape: f32[1,256], index: 5, kind: input, shape index: {}]   ;;  %s3188_s6 = inlined_call_operand.hbm [shape: f32[128,128], index: 6, kind: input, shape index: {}]   ;;  %s3189_s7 = inlined_call_operand.vmem [shape: f32[1,128], index: 7, kind: input, shape index: {}]   ;;  %s3190_s8 = inlined_call_operand.vmem [shape: f32[1,128], index: 8, kind: input, shape index: {}]   ;;  %s3191_s9 = inlined_call_operand.vmem [shape: f32[1,128], index: 9, kind: input, shape index: {}]   ;;  %s3192_s10 = inlined_call_operand.hbm [shape: f32[2,16,128], index: 10, kind: output, shape index: {}]  }
   0x1   :  { %3206 = sst [smem:[#allocation26_spill]] %s3182_s0 }
   0x2   :  { %3207 = sst [smem:[#allocation27_spill]] %s3184_s2 }
   0x3   :  { %3208 = sst [smem:[#allocation28_spill]] %s3186_s4 }
   0x4   :  { %3209 = sst [smem:[#allocation29_spill]] %s3188_s6 }
   0x5   :  { %3210 = sst [smem:[#allocation30_spill]] %s3192_s10 }
   0x6   :  { %15 = vsyncpa [#allocation5], 0 }
   0x7   :  { %17 = vsyncpa [#allocation5 + $0x1], 0 }
   0x8   :  { %18 = vsyncpa [#allocation8], 0 }
   0x9   :  { %20 = vsyncpa [#allocation8 + $0x1], 0 }
   0xa   :  { %21 = vsyncpa [#allocation11], 0 }
   0xb   :  { %22 = vsyncpa [#allocation6], 0 }
   0xc   :  { %24 = vsyncpa [#allocation6 + $0x1], 0  ;;  %s2710_s13 = smov 0   ;;  %s2712_s14 = smov 0  }
   0xd   :  { %s2714_s15 = smov 0   ;;  %s2716_s16 = smov 0  }
   0xe   :  { %s2718_s17 = smov 0   ;;  %s2720_s18 = smov 0  }
   0xf LB: > { %3211 = sst [smem:[#allocation19_spill]] %s2617_s13  ;;  %s2741_s19 = sadd.s32 4294967295, %s2637_s18   ;;  %s2637_s18 = sphi %s2720_s18, %s30_s18   ;;  %s2633_s17 = sphi %s2718_s17, %s3243_s17   ;;  %s2629_s16 = sphi %s2716_s16, %s3242_s16   ;;  %s2625_s15 = sphi %s2714_s15, %s3238_s15   ;;  %s2621_s14 = sphi %s2712_s14, %s3241_s14   ;;  %s2617_s13 = sphi %s2710_s13, %s3240_s13  }
  0x10   : > { %3212 = sst [smem:[#allocation20_spill]] %s2625_s15  ;;  %s1962_s20 = sadd.s32 4294967294, %s2637_s18  }
  0x11   : > { %3213 = sst [smem:[#allocation21_spill]] %s2637_s18  ;;  %p64_p0 = scmp.ne.s32.totalorder %s2621_s14, %s2617_s13 }
  0x12   : > { %p65_p1 = scmp.eq.s32.totalorder %s2741_s19, 0  ;;  %p284_p2 = scmp.eq.s32.totalorder %s2741_s19, 1 }
  0x13   : > { %p290_p3 = scmp.eq.s32.totalorder %s1962_s20, 1  ;;  %p1963_p5 = scmp.ge.s32.totalorder %s2637_s18, 1 }
  0x14   : > { %p2750_p4 = por %p65_p1, %p64_p0  ;;  %p297_p7 = scmp.lt.s32.totalorder %s2637_s18, 3 }
  0x15   : > { %p2755_p6 = por %p290_p3, %p64_p0  ;;  %s2639_s24 = smov [#allocation9]  }
  0x16   : > { %p2760_p8 = pnand %p1963_p5, %p297_p7  ;;  %s309_s25 = sshll.u32 %s2639_s24, 4  ;;  %s310_s25 = int_to_ptr.vmem [resolvable:$true] %s309_s25 }
  0x17   : > { %s3215_s22 = scalar_select %p2755_p6, 1, 0 }
  0x18   : > { %p2285_p9 = pneg %p2760_p8  ;;  %s2640_s27 = smov [#allocation10]  }
  0x19   : > { %3216 = sst [smem:[#allocation22_spill]] %s3215_s22  ;;  %s325_s28 = sshll.u32 %s2640_s27, 4  ;;  %s326_s28 = int_to_ptr.vmem [resolvable:$true] %s325_s28 }
  0x1a   : > { %p2769_p11 = pnand %p2285_p9, %p65_p1  ;;  %s2422_s29 = scalar_lea.vmem %s310_s25, 2048 }
  0x1b   : > { %p2423_p13 = scmp.ne.s32.totalorder %s310_s25, %s2422_s29  ;;  %p2430_p5 = scmp.lt.s32.totalorder %s310_s25, %s310_s25 }
  0x1c   : > { %p2413_p12 = pneg %p2769_p11  ;;  %p2431_p7 = scmp.lt.s32.totalorder %s2422_s29, %s2422_s29 }
  0x1e   : > { %p2425_p0 = pnand %p2423_p13, %p2413_p12  ;;  %p2432_p10 = por %p2431_p7, %p2430_p5 }
  0x20   : > { %p2426_p3 = pneg %p2425_p0 }
  0x22   : > { %p2433_p9 = pnand %p2432_p10, %p2426_p3 }
  0x24   : > { %2436 = shalt.err (!%p2433_p9)
}
  0x25   : > { %s3195_s30 = smov 128   ;;  %s3197_s11 = smov 8  }
  0x26   : > { %s3219_s2 = sld [smem:[#allocation27_spill]]  ;;  %s2448_s24 = scalar_lea.vmem %s326_s28, 4096 }
  0x27   : > { %p2449_p13 = scmp.ne.s32.totalorder %s326_s28, %s2448_s24  ;;  %p2456_p10 = scmp.lt.s32.totalorder %s326_s28, %s326_s28 }
  0x28   : > { %p2457_p3 = scmp.lt.s32.totalorder %s2448_s24, %s2448_s24 }
  0x29   : > { %p2451_p0 = pnand %p2449_p13, %p2413_p12 }
  0x2a   : > { %p2458_p7 = por %p2457_p3, %p2456_p10 }
  0x2b   : > { %p2452_p5 = pneg %p2451_p0 }
  0x2c   : > { %2288 = dma.hbm_to_vmem [thread:$0]  (!%p2769_p11), %s3219_s2, 2048, %s310_s25, [#allocation8], %s3195_s30, %s3195_s30, %s3197_s11  }
  0x2d   : > { %p2459_p9 = pnand %p2458_p7, %p2452_p5 }
  0x2f   : > { %2462 = shalt.err (!%p2459_p9)
}
  0x30   : > { %s2643_s27 = smov 256   ;;  %s2644_s29 = smov 16  }
  0x31   : > { %s3220_s4 = sld [smem:[#allocation28_spill]]  ;;  %s2645_s25 = smov [#allocation12]  }
  0x32   : > { %s341_s12 = sshll.u32 %s2645_s25, 4  ;;  %s342_s12 = int_to_ptr.vmem [resolvable:$true] %s341_s12 }
  0x33   : > { %s2474_s20 = scalar_lea.vmem %s342_s12, 2048  ;;  %p2482_p5 = scmp.lt.s32.totalorder %s342_s12, %s342_s12 }
  0x34   : > { %p2475_p13 = scmp.ne.s32.totalorder %s342_s12, %s2474_s20  ;;  %p2483_p3 = scmp.lt.s32.totalorder %s2474_s20, %s2474_s20 }
  0x36   : > { %p2477_p0 = pnand %p2475_p13, %p2413_p12  ;;  %p2484_p7 = por %p2483_p3, %p2482_p5 }
  0x37   : > { %2291 = dma.hbm_to_vmem [thread:$0]  (!%p2769_p11), %s3220_s4, 4096, %s326_s28, [#allocation11], %s2643_s27, %s2643_s27, %s2644_s29  }
  0x38   : > { %p2478_p10 = pneg %p2477_p0 }
  0x3a   : > { %p2485_p9 = pnand %p2484_p7, %p2478_p10 }
  0x3c   : > { %2488 = shalt.err (!%p2485_p9)
}
  0x3d   : > { %s3221_s6 = sld [smem:[#allocation29_spill]]  ;;  %s42_s28 = sadd.s32 1, %s2633_s17 }
  0x3e   : > { %p44_p12 = scmp.ge.s32.totalorder %s42_s28, 2  ;;  %s51_s26 = sadd.s32 1, %s2625_s15 }
  0x3f   : > { %p58_p13 = scmp.ne.s32.totalorder %s2625_s15, %s2621_s14  ;;  %p59_p0 = scmp.eq.s32.totalorder %s2637_s18, 0 }
  0x40   : > { %s3245_s28 = smov (%p44_p12, %s42_s28), 0  ;;  %s2826_s25 = sand.u32 1, %s2625_s15  }
  0x41   : > { %3222 = sst [smem:[#allocation23_spill]] %s3245_s28  ;;  %p2812_p10 = por %p59_p0, %p58_p13 }
  0x42   : > { %p2818_p5 = por %p284_p2, %p58_p13  ;;  %s46_s29 = ssub.s32 %s2633_s17, %s3245_s28 }
  0x43   : > { %2294 = dma.hbm_to_vmem [thread:$0]  (!%p2769_p11), %s3221_s6, 2048, %s342_s12, [#allocation11], %s3195_s30, %s3195_s30, %s3197_s11  }
  0x44   : > { %s3224_s27 = scalar_select %p2818_p5, 1, 0 }
  0x45   : > { %p2309_p11 = scmp.lt.s32.totalorder %s2637_s18, 2  ;;  %p49_p3 = scmp.eq.s32.totalorder %s46_s29, 0 }
  0x46   : > { %3225 = sst [smem:[#allocation24_spill]] %s3224_s27  ;;  %s1968_s12 = sshll.u32 %s2826_s25, 4 }
  0x47   : > { %s2830_s20 = scalar_select %p49_p3, %s2625_s15, %s51_s26  }
  0x48   : > { %s2022_s13 = sshll.u32 %s2633_s17, 8  ;;  %s3227_s0 = sld [smem:[#allocation26_spill]] }
  0x49   : > { %3226 = sst [smem:[#allocation25_spill]] %s2830_s20  ;;  %s368_s2 = scalar_lea.vmem [#allocation4], %s1968_s12 }
  0x4a   : > { %s377_s4 = sshll.u32 %s368_s2, 4  ;;  %p2838_p2 = pnand %p2309_p11, %p2812_p10  ;;  %s378_s4 = int_to_ptr.vmem [resolvable:$true] %s377_s4 }
  0x4b   : > { %s387_s29 = sand.u32 1, %s2637_s18   ;;  %s1971_s28 = sshll.u32 %s2826_s25, 5 }
  0x4c   : > { %s365_s10 = scalar_lea.sflag [#allocation5], %s2826_s25  ;;  %p2491_p7 = pneg %p2838_p2 }
  0x4d   : > { %s2502_s26 = scalar_lea.vmem %s378_s4, 256  ;;  %s2646_s2 = smov [#allocation4]  }
  0x4e   : > { %s376_s11 = scalar_lea.hbm %s3227_s0, %s2022_s13  ;;  %p2503_p9 = scmp.ne.s32.totalorder %s378_s4, %s2502_s26 }
  0x4f   : > { %s2507_s30 = sshll.u32 %s2646_s2, 4  ;;  %s2508_s30 = int_to_ptr.vmem [resolvable:$false] %s2507_s30 }
  0x50   : > { %p2505_p12 = pnand %p2503_p9, %p2491_p7  ;;  %s2509_s24 = scalar_lea.vmem %s2508_s30, 512 }
  0x51   : > { %p2510_p0 = scmp.lt.s32.totalorder %s378_s4, %s2508_s30  ;;  %p2511_p10 = scmp.lt.s32.totalorder %s2509_s24, %s2502_s26 }
  0x52   : > { %p2506_p13 = pneg %p2505_p12 }
  0x53   : > { %p2512_p11 = por %p2511_p10, %p2510_p0 }
  0x55   : > { %p2513_p3 = pnand %p2512_p11, %p2506_p13 }
  0x57   : > { %2516 = shalt.err (!%p2513_p3)
}
  0x58   : > { %s3229_s25 = smov 8   ;;  %s3230_s12 = smov 128  }
  0x59   : > { %2298 = dma.hbm_to_vmem [thread:$0]  (!%p2838_p2), %s376_s11, 256, %s378_s4, %s365_s10, %s3230_s12, %s3230_s12, %s3229_s25  }
  0x5a   : > { %s2023_s13 = sshll.u32 %s2633_s17, 9  ;;  %s391_s20 = scalar_lea.vmem [#allocation7], %s1971_s28 }
  0x5b   : > { %s397_s2 = scalar_lea.hbm %s3183_s1, %s2023_s13  ;;  %s398_s15 = sshll.u32 %s391_s20, 4  ;;  %s399_s15 = int_to_ptr.vmem [resolvable:$true] %s398_s15 }
  0x5c   : > { %s388_s26 = scalar_lea.sflag [#allocation8], %s387_s29  ;;  %s2530_s30 = scalar_lea.vmem %s399_s15, 512 }
  0x5d   : > { %p2531_p9 = scmp.ne.s32.totalorder %s399_s15, %s2530_s30  ;;  %s2647_s24 = smov [#allocation7]  }
  0x5e   : > { %s2535_s18 = sshll.u32 %s2647_s24, 4  ;;  %s2536_s18 = int_to_ptr.vmem [resolvable:$false] %s2535_s18 }
  0x5f   : > { %p2533_p12 = pnand %p2531_p9, %p2491_p7  ;;  %s2537_s27 = scalar_lea.vmem %s2536_s18, 1024 }
  0x60   : > { %p2538_p0 = scmp.lt.s32.totalorder %s399_s15, %s2536_s18  ;;  %p2539_p10 = scmp.lt.s32.totalorder %s2537_s27, %s2530_s30 }
  0x61   : > { %p2534_p13 = pneg %p2533_p12 }
  0x62   : > { %p2540_p11 = por %p2539_p10, %p2538_p0 }
  0x64   : > { %p2541_p3 = pnand %p2540_p11, %p2534_p13 }
  0x66   : > { %2544 = shalt.err (!%p2541_p3)
}
  0x67   : > { %2301 = dma.hbm_to_vmem [thread:$0]  (!%p2838_p2), %s397_s2, 512, %s399_s15, %s388_s26, %s3230_s12, %s3230_s12, %s3229_s25  }
  0x68   : > { %410 = sbr.rel (%p2760_p8) target bundleno = 2323 (0x913), region = 60  ;;  %s2870_s0 = sand.u32 (!%p2760_p8), 1, %s2621_s14  }
  0x69   : > { %s1975_s4 = sshll.u32 (!%p2760_p8), %s2870_s0, 4  ;;  %s413_s10 = scalar_lea.sflag (!%p2760_p8), [#allocation5], %s2870_s0 }
  0x6a   : > { %s2876_s18 = scalar_lea.vmem (!%p2760_p8), [#allocation4], %s1975_s4 }
  0x6d   : > { %2596 = dma.done.wait (%p2750_p4), %s413_s10, 256  }
  0x6e   : > { %2598 = vsyncadd (%p2750_p4), %s413_s10, 4294967040  ;;  %s421_s6 = sand.u32 1, %s2741_s19   ;;  %s1976_s15 = sshll.u32 %s2870_s0, 5 }
  0x6f   : > { %s422_s23 = scalar_lea.sflag [#allocation8], %s421_s6  ;;  %s2884_s11 = scalar_lea.vmem [#allocation7], %s1976_s15 }
  0x70   : > { %2600 = dma.done.wait (%p2750_p4), %s422_s23, 512  }
  0x71   : > { %2602 = vsyncadd (%p2750_p4), %s422_s23, 4294966784 }
  0x72   : > { %2604 = dma.done.wait (%p65_p1), [#allocation8], 2048  }
  0x73   : > { %2606 = vsyncadd (%p65_p1), [#allocation8], 4294965248 }
  0x74   : > { %2608 = dma.done.wait (%p65_p1), [#allocation11], 6144  }
  0x75   : > { %2610 = vsyncadd (%p65_p1), [#allocation11], 4294961152  ;;  %v2648_v0 = vmov 0.0   ;;  %v520_v1 = vld [vmem:[#allocation10 + $0xf8] sm:$0xff]  ;;  %v519_v2 = vld [vmem:[#allocation10 + $0xf0] sm:$0xff]  ;;  %v523_v55 = vlaneseq  ;;  %vm740_vm0 = vcmask 261120  }
  0x76   : > { %597 = vmatprep.mubr.f32.mxu0 %v2648_v0  ;;  %v518_v3 = vld [vmem:[#allocation10 + $0xe8] sm:$0xff]  ;;  %533 = vmatprep.subr.mxu0 %v520_v1  ;;  %v517_v4 = vld [vmem:[#allocation10 + $0xe0] sm:$0xff]  ;;  %v516_v5 = vld [vmem:[#allocation10 + $0xd8] sm:$0xff]  ;;  %s2649_s20 = smov 96   ;;  %s2650_s29 = smov 64   ;;  %vm1177_vm1 = vcmask 523520  }
  0x77   : > { %534 = vmatpush1.msra.mxu0 %v519_v2  ;;  %v515_v6 = vld [vmem:[#allocation10 + $0xd0] sm:$0xff]  ;;  %v514_v7 = vld [vmem:[#allocation10 + $0xc8] sm:$0xff]  ;;  %v513_v8 = vld [vmem:[#allocation10 + $0xc0] sm:$0xff]  ;;  %v524_v58 = vshrl.u32 %v523_v55, 7  ;;  %s2651_s25 = smov 32   ;;  %vm1418_vm2 = vcmask 785920  }
  0x78   : > { %535 = vmatprep.subr.mxu0 %v518_v3  ;;  %v512_v9 = vld [vmem:[#allocation10 + $0xb8] sm:$0xff]  ;;  %v511_v10 = vld [vmem:[#allocation10 + $0xb0] sm:$0xff]  ;;  %v510_v12 = vld [vmem:[#allocation10 + $0xa8] sm:$0xff]  ;;  %vm1659_vm3 = vcmask 1048320   ;;  %s2024_s10 = sshll.u32 %s2629_s16, 8  ;;  %s1808_s21 = scalar_lea.sflag [#allocation6], %s2870_s0 }
  0x79   : > { %536 = vmatpush1.msra.mxu0 %v517_v4  ;;  %v647_v11 = vld [vmem:[#allocation9 + $0x78] sm:$0xff]  ;;  %v646_v13 = vld [vmem:[#allocation9 + $0x70] sm:$0xff]  ;;  %v509_v14 = vld [vmem:[#allocation10 + $0xa0] sm:$0xff]  ;;  %v525_v61 = vsub.s32 0, %v524_v58 }
  0x7a   : > { %537 = vmatprep.subr.mxu0 %v516_v5  ;;  %2109 = vmatprep.subr.mxu1 %v647_v11  ;;  %v645_v15 = vld [vmem:[#allocation9 + $0x68] sm:$0xff]  ;;  %v508_v16 = vld [vmem:[#allocation10 + $0x98] sm:$0xff]  ;;  %v507_v17 = vld [vmem:[#allocation10 + $0x90] sm:$0xff] }
  0x7b   : > { %538 = vmatpush1.msra.mxu0 %v515_v6  ;;  %2110 = vmatpush3.msra.mxu1 %v647_v11  ;;  %v644_v18 = vld [vmem:[#allocation9 + $0x60] sm:$0xff]  ;;  %v506_v19 = vld [vmem:[#allocation10 + $0x88] sm:$0xff]  ;;  %v643_v21 = vld [vmem:[#allocation9 + $0x58] sm:$0xff] }
  0x7c   : > { %539 = vmatprep.subr.mxu0 %v514_v7  ;;  %2111 = vmatprep.subr.mxu1 %v646_v13  ;;  %v505_v20 = vld [vmem:[#allocation10 + $0x80] sm:$0xff]  ;;  %v504_v22 = vld [vmem:[#allocation10 + $0x78] sm:$0xff]  ;;  %v503_v23 = vld [vmem:[#allocation10 + $0x70] sm:$0xff] }
  0x7d   : > { %540 = vmatpush1.msra.mxu0 %v513_v8  ;;  %2112 = vmatpush3.msra.mxu1 %v646_v13  ;;  %v642_v24 = vld [vmem:[#allocation9 + $0x50] sm:$0xff]  ;;  %v502_v25 = vld [vmem:[#allocation10 + $0x68] sm:$0xff]  ;;  %v501_v26 = vld [vmem:[#allocation10 + $0x60] sm:$0xff] }
  0x7e   : > { %541 = vmatprep.subr.mxu0 %v512_v9  ;;  %2113 = vmatprep.subr.mxu1 %v645_v15  ;;  %v641_v27 = vld [vmem:[#allocation9 + $0x48] sm:$0xff]  ;;  %v500_v28 = vld [vmem:[#allocation10 + $0x58] sm:$0xff]  ;;  %v499_v29 = vld [vmem:[#allocation10 + $0x50] sm:$0xff] }
  0x7f   : > { %542 = vmatpush1.msra.mxu0 %v511_v10  ;;  %2114 = vmatpush3.msra.mxu1 %v645_v15  ;;  %v640_v30 = vld [vmem:[#allocation9 + $0x40] sm:$0xff]  ;;  %v498_v31 = vld [vmem:[#allocation10 + $0x48] sm:$0xff]  ;;  %v639_v33 = vld [vmem:[#allocation9 + $0x38] sm:$0xff] }
  0x80   : > { %543 = vmatprep.subr.mxu0 %v510_v12  ;;  %2115 = vmatprep.subr.mxu1 %v644_v18  ;;  %v497_v32 = vld [vmem:[#allocation10 + $0x40] sm:$0xff]  ;;  %v496_v34 = vld [vmem:[#allocation10 + $0x38] sm:$0xff]  ;;  %v495_v35 = vld [vmem:[#allocation10 + $0x30] sm:$0xff] }
  0x81   : > { %544 = vmatpush1.msra.mxu0 %v509_v14  ;;  %2116 = vmatpush3.msra.mxu1 %v644_v18  ;;  %v638_v36 = vld [vmem:[#allocation9 + $0x30] sm:$0xff]  ;;  %v494_v37 = vld [vmem:[#allocation10 + $0x28] sm:$0xff]  ;;  %v493_v38 = vld [vmem:[#allocation10 + $0x20] sm:$0xff] }
  0x82   : > { %545 = vmatprep.subr.mxu0 %v508_v16  ;;  %2117 = vmatprep.subr.mxu1 %v643_v21  ;;  %v637_v39 = vld [vmem:[#allocation9 + $0x28] sm:$0xff]  ;;  %v492_v40 = vld [vmem:[#allocation10 + $0x18] sm:$0xff]  ;;  %v491_v41 = vld [vmem:[#allocation10 + $0x10] sm:$0xff] }
  0x83   : > { %546 = vmatpush1.msra.mxu0 %v507_v17  ;;  %2118 = vmatpush3.msra.mxu1 %v643_v21  ;;  %v636_v42 = vld [vmem:[#allocation9 + $0x20] sm:$0xff]  ;;  %v490_v43 = vld [vmem:[#allocation10 + $0x8] sm:$0xff]  ;;  %v635_v45 = vld [vmem:[#allocation9 + $0x18] sm:$0xff] }
  0x84   : > { %547 = vmatprep.subr.mxu0 %v506_v19  ;;  %2119 = vmatprep.subr.mxu1 %v642_v24  ;;  %v489_v44 = vld [vmem:[#allocation10] sm:$0xff]  ;;  %v634_v47 = vld [vmem:[#allocation9 + $0x10] sm:$0xff]  ;;  %v633_v49 = vld [vmem:[#allocation9 + $0x8] sm:$0xff] }
  0x85   : > { %548 = vmatpush1.msra.mxu0 %v505_v20  ;;  %2120 = vmatpush3.msra.mxu1 %v642_v24  ;;  %v485_v46 = vld [vmem:[%s2884_s11] sm:$0xff]  ;;  %v486_v50 = vld [vmem:[%s2884_s11 + $0x8] sm:$0xff]  ;;  %v487_v53 = vld [vmem:[%s2884_s11 + $0x10] sm:$0xff] }
  0x86   : > { %549 = vmatprep.subr.mxu0 %v504_v22  ;;  %2121 = vmatprep.subr.mxu1 %v641_v27  ;;  %v2901_v48 = vld [vmem:[%s2876_s18] sm:$0xff]  ;;  %v2907_v52 = vld [vmem:[%s2876_s18 + $0x8] sm:$0xff]  ;;  %s478_s18 = scalar_lea.vmem [#allocation13], %s1975_s4  ;;  %s2652_s4 = smov [#allocation13]  }
  0x87   : > { %550 = vmatpush1.msra.mxu0 %v503_v23  ;;  %2122 = vmatpush3.msra.mxu1 %v641_v27  ;;  %v632_v51 = vld [vmem:[#allocation9] sm:$0xff]  ;;  %v488_v54 = vld [vmem:[%s2884_s11 + $0x18] sm:$0xff]  ;;  %v1981_v63 = vld [vmem:[%s3185_s3] ss:$0 sm:$0xff]  ;;  %s1823_s6 = sshll.u32 %s478_s18, 4  ;;  %s3232_s11 = sld [smem:[#allocation30_spill]]  ;;  %s3134_s6 = int_to_ptr.vmem [resolvable:$true] %s1823_s6 }
  0x88   : > { %551 = vmatprep.subr.mxu0 %v502_v25  ;;  %2123 = vmatprep.subr.mxu1 %v640_v30  ;;  %v521_v1 = vld [vmem:[%s3187_s5] sm:$0x3]  ;;  %s2545_s16 = scalar_lea.vmem %s3134_s6, 256  ;;  %s2549_s28 = sshll.u32 %s2652_s4, 4  ;;  %s2550_s28 = int_to_ptr.vmem [resolvable:$false] %s2549_s28 }
  0x89   : > { %552 = vmatpush1.msra.mxu0 %v501_v26  ;;  %2124 = vmatpush3.msra.mxu1 %v640_v30  ;;  %v526_v6 = vrot.slane %v521_v1, %v525_v61  ;;  %p2546_p1 = scmp.ne.s32.totalorder %s3134_s6, %s2545_s16  ;;  %s2551_s27 = scalar_lea.vmem %s2550_s28, 512 }
  0x8a   : > { %553 = vmatprep.subr.mxu0 %v500_v28  ;;  %2125 = vmatprep.subr.mxu1 %v639_v33  ;;  %p2552_p2 = scmp.lt.s32.totalorder %s3134_s6, %s2550_s28  ;;  %p2553_p7 = scmp.lt.s32.totalorder %s2551_s27, %s2545_s16 }
  0x8b   : > { %554 = vmatpush1.msra.mxu0 %v499_v29  ;;  %2126 = vmatpush3.msra.mxu1 %v639_v33  ;;  %p2547_p4 = pnand %p2546_p1, %p2818_p5 }
  0x8c   : > { %555 = vmatprep.subr.mxu0 %v498_v31  ;;  %2127 = vmatprep.subr.mxu1 %v638_v36  ;;  %p2554_p9 = por %p2553_p7, %p2552_p2 }
  0x8d   : > { %556 = vmatpush1.msra.mxu0 %v497_v32  ;;  %2128 = vmatpush3.msra.mxu1 %v638_v36  ;;  %s3132_s19 = scalar_lea.hbm %s3232_s11, %s2024_s10  ;;  %p2548_p8 = pneg %p2547_p4 }
  0x8e   : > { %557 = vmatprep.subr.mxu0 %v496_v34  ;;  %2129 = vmatprep.subr.mxu1 %v637_v39 }
  0x8f   : > { %558 = vmatpush1.msra.mxu0 %v495_v35  ;;  %2130 = vmatpush3.msra.mxu1 %v637_v39  ;;  %p2555_p12 = pnand %p2554_p9, %p2548_p8 }
  0x90   : > { %559 = vmatprep.subr.mxu0 %v494_v37  ;;  %2131 = vmatprep.subr.mxu1 %v636_v42 }
  0x91   : > { %560 = vmatpush1.msra.mxu0 %v493_v38  ;;  %2132 = vmatpush3.msra.mxu1 %v636_v42 }
  0x92   : > { %561 = vmatprep.subr.mxu0 %v492_v40  ;;  %2133 = vmatprep.subr.mxu1 %v635_v45 }
  0x93   : > { %562 = vmatpush1.msra.mxu0 %v491_v41  ;;  %2134 = vmatpush3.msra.mxu1 %v635_v45 }
  0x94   : > { %563 = vmatprep.subr.mxu0 %v490_v43  ;;  %2135 = vmatprep.subr.mxu1 %v634_v47 }
  0x95   : > { %564 = vmatpush1.msra.mxu0 %v489_v44  ;;  %2136 = vmatpush3.msra.mxu1 %v634_v47 }
  0x96   : > { %598 = vmatmul.mubr.f32.vlgmr.msra.gmra.mxu0 %v485_v46  ;;  %2141 = vmatprep.mubr.f32.mxu1 %v2901_v48 }
  0x97   : > { %603 = vmatprep.mubr.f32.mxu0 %v2648_v0  ;;  %2137 = vmatprep.subr.mxu1 %v633_v49 }
  0x98   : > { %2138 = vmatpush3.msra.mxu1 %v633_v49 }
  0x99   : > { %2139 = vmatprep.subr.mxu1 %v632_v51 }
  0x9a   : > { %604 = vmatmul.mubr.f32.gmra.mxu0 %v486_v50  ;;  %2140 = vmatpush3.msra.mxu1 %v632_v51 }
  0x9b   : > { %609 = vmatprep.mubr.f32.mxu0 %v2648_v0  ;;  %2142 = vmatmul.mubr.f32.vlgmr.msra.gmra.mxu1 %v2907_v52 }
  0x9e   : > { %610 = vmatmul.mubr.f32.gmra.mxu0 %v487_v53 }
  0x9f   : > { %615 = vmatprep.mubr.f32.mxu0 %v2648_v0  ;;  %v529_v0 = vsub.s32 1, %v524_v58 }
  0xa1   : > { %v530_v9 = vrot.slane %v521_v1, %v529_v0 }
  0xa2   : > { %616 = vmatmul.mubr.f32.gmra.mxu0 %v488_v54 }
 0x156   : > { %v599_v56 = vpop.f32.mrf.mxu0 }
 0x157   : > { %v2952_v17 = vadd.f32 %v599_v56, %v526_v6 }
 0x158   : > { %v601_v57 = vpop.f32.mrf.mxu0 }
 0x159   : > { %v2954_v18 = vadd.f32 %v601_v57, %v530_v9 }
 0x15a   : > { %v605_v59 = vpop.f32.mrf.mxu0 }
 0x15b   : > { %v2143_v62 = vpop.f32.mrf.mxu1  ;;  %v2942_v15 = vadd.f32 %v605_v59, %v526_v6 }
 0x15c   : > { %v607_v60 = vpop.f32.mrf.mxu0  ;;  %v727_v19 = vadd.f32 %v2143_v62, %v1981_v63 }
 0x15d   : > { %v721_v3 = vpop.f32.mrf.mxu1  ;;  %v2944_v16 = vadd.f32 %v607_v60, %v530_v9 }
 0x15e   : > { %v611_v2 = vpop.f32.mrf.mxu0  ;;  %v722_v5 = vadd.f32 %v1981_v63, %v721_v3  ;;  %v2972_v20 = vmul.f32 0.17677669, %v727_v19 }
 0x15f   : > { %v2926_v12 = vadd.f32 %v611_v2, %v526_v6 }
 0x160   : > { %v613_v4 = vpop.f32.mrf.mxu0  ;;  %v2920_v8 = vmul.f32 0.17677669, %v722_v5 }
 0x161   : > { %v2936_v14 = vadd.f32 %v613_v4, %v530_v9 }
 0x162   : > { %v617_v7 = vpop.f32.mrf.mxu0  ;;  %2152 = vmatprep.mubr.msk.f32.mxu0 %vm740_vm0, %v2920_v8 }
 0x163   : > { %v2922_v10 = vadd.f32 %v617_v7, %v526_v6 }
 0x164   : > { %v619_v11 = vpop.f32.mrf.mxu0 }
 0x165   : > { %v2928_v13 = vadd.f32 %v619_v11, %v530_v9  ;;  %961 = vrot.lane.b32.xlu1 %v2922_v10, %s2649_s20  ;;  %2144 = vmatprep.subr.msk.mxu0 %vm740_vm0, %v2922_v10 }
 0x166   : > { %2145 = vmatpush3.xpose.msk.msra.mxu0 %vm740_vm0, %v2922_v10 }
 0x167   : > { %2146 = vmatprep.subr.msk.mxu0 %vm740_vm0, %v2926_v12  ;;  %2155 = vmatprep.subr.mxu1 %v2928_v13 }
 0x168   : > { %2156 = vmatpush3.msra.mxu1 %v2928_v13 }
 0x169   : > { %2157 = vmatprep.subr.mxu1 %v2936_v14  ;;  %959 = vrot.lane.b32.xlu1 %v2926_v12, %s2649_s20 }
 0x16a   : > { %2147 = vmatpush3.xpose.msk.msra.mxu0 %vm740_vm0, %v2926_v12  ;;  %2158 = vmatpush3.msra.mxu1 %v2936_v14 }
 0x16b   : > { %2148 = vmatprep.subr.msk.mxu0 %vm740_vm0, %v2942_v15  ;;  %2159 = vmatprep.subr.mxu1 %v2944_v16 }
 0x16c   : > { %2160 = vmatpush3.msra.mxu1 %v2944_v16 }
 0x16d   : > { %2161 = vmatprep.subr.mxu1 %v2954_v18  ;;  %955 = vrot.lane.b32.xlu1 %v2952_v17, %s2649_s20 }
 0x16e   : > { %2149 = vmatpush3.xpose.msk.msra.mxu0 %vm740_vm0, %v2942_v15  ;;  %2162 = vmatpush3.msra.mxu1 %v2954_v18 }
 0x16f   : > { %2150 = vmatprep.subr.msk.mxu0 %vm740_vm0, %v2952_v17 }
 0x171   : > { %947 = vrot.lane.b32.xlu1 %v2920_v8, %s2649_s20 }
 0x172   : > { %2151 = vmatpush3.xpose.msk.msra.mxu0 %vm740_vm0, %v2952_v17 }
 0x175   : > { %1202 = vrot.lane.b32.xlu1 %v2922_v10, %s2650_s29  ;;  %2153 = vmatmul.mubr.msk.f32.vlgmr.msra.gmra.mxu0 %vm740_vm0, %v2972_v20 }
 0x179   : > { %949 = vrot.lane.b32.xlu1 %v2972_v20, %s2649_s20 }
 0x17d   : > { %1200 = vrot.lane.b32.xlu1 %v2926_v12, %s2650_s29 }
 0x181   : > { %1198 = vrot.lane.b32.xlu1 %v2942_v15, %s2650_s29 }
 0x185   : > { %1188 = vrot.lane.b32.xlu1 %v2920_v8, %s2650_s29 }
 0x189   : > { %1317 = vrot.lane.b32.xlu1 %v2936_v14, %s2650_s29 }
 0x18d   : > { %1315 = vrot.lane.b32.xlu1 %v2944_v16, %s2650_s29 }
 0x1d7   : > { %v962_v21 = vpop.permute.xlu1 %961 }
 0x1d8   : > { %2166 = vmatprep.subr.msk.mxu1 %vm740_vm0, %v962_v21 }
 0x1db   : > { %v960_v26 = vpop.permute.xlu1 %959 }
 0x1df   : > { %v956_v29 = vpop.permute.xlu1 %955 }
 0x1e3   : > { %v948_v34 = vpop.permute.xlu1 %947 }
 0x1e7   : > { %v1203_v35 = vpop.permute.xlu1 %1202 }
 0x1eb   : > { %v950_v37 = vpop.permute.xlu1 %949 }
 0x1ef   : > { %v1201_v39 = vpop.permute.xlu1 %1200 }
 0x1f3   : > { %v1199_v41 = vpop.permute.xlu1 %1198 }
 0x1f7   : > { %v1189_v42 = vpop.permute.xlu1 %1188 }
 0x1fb   : > { %v1318_v45 = vpop.permute.xlu1 %1317 }
 0x1ff   : > { %v1316_v47 = vpop.permute.xlu1 %1315 }
 0x235   : > { %v2154_v22 = vpop.f32.mrf.mxu0 }
 0x236   : > { %v837_v25 = vsel %vm740_vm0, %v2154_v22, -inf }
 0x237   : > { %v825_v23 = vpop.f32.mrf.mxu0 }
 0x238   : > { %v834_v24 = vsel %vm740_vm0, %v825_v23, -inf }
 0x239   : > { %835 = vmax.xlane.f32.xlu0 %v834_v24 }
 0x23d   : > { %838 = vmax.xlane.f32.xlu0 %v837_v25 }
 0x253   : > { %957 = vrot.lane.b32.xlu0 %v2942_v15, %s2649_s20 }
 0x257   : > { %1196 = vrot.lane.b32.xlu0 %v2952_v17, %s2650_s29 }
 0x25b   : > { %1190 = vrot.lane.b32.xlu0 %v2972_v20, %s2650_s29 }
 0x25f   : > { %1319 = vrot.lane.b32.xlu0 %v2928_v13, %s2650_s29 }
 0x2c2   : > { %v836_v27 = vpop.xlane.xlu0 %835 }
 0x2c3   : > { %v840_v28 = vsub.f32 %v825_v23, %v836_v27 }
 0x2c5   : > { %v842_v30 = vmul.f32 1.442695, %v840_v28 }
 0x2c6   : > { %v839_v31 = vpop.xlane.xlu0 %838 }
 0x2c7   : > { %2375 = vpow2.f32 %v842_v30  ;;  %v841_v32 = vsub.f32 %v2154_v22, %v839_v31 }
 0x2c9   : > { %v844_v33 = vmul.f32 1.442695, %v841_v32 }
 0x2ca   : > { %v958_v40 = vpop.permute.xlu0 %957 }
 0x2cb   : > { %2377 = vpow2.f32 %v844_v33 }
 0x2ce   : > { %v1197_v43 = vpop.permute.xlu0 %1196 }
 0x2d2   : > { %v1191_v44 = vpop.permute.xlu0 %1190 }
 0x2d4   : > { %v3001_v36 = vpop.eup %2375 }
 0x2d5   : > { %2163 = vmatprep.mubr.msk.f32.mxu1 %vm740_vm0, %v3001_v36 }
 0x2d6   : > { %v1320_v46 = vpop.permute.xlu0 %1319 }
 0x2d8   : > { %v3005_v38 = vpop.eup %2377 }
 0x2d9   : > { %2164 = vmatmul.mubr.msk.f32.vlgmr.msra.gmra.mxu1 %vm740_vm0, %v3005_v38 }
 0x2da   : > { %2167 = vmatpush3.xpose.msk.msra.mxu1 %vm740_vm0, %v962_v21  ;;  %2174 = vmatprep.mubr.msk.f32.mxu1 %vm740_vm0, %v948_v34 }
 0x2db   : > { %2168 = vmatprep.subr.msk.mxu1 %vm740_vm0, %v960_v26 }
 0x2de   : > { %2169 = vmatpush3.xpose.msk.msra.mxu1 %vm740_vm0, %v960_v26 }
 0x2df   : > { %2170 = vmatprep.subr.msk.mxu1 %vm740_vm0, %v958_v40 }
 0x2e2   : > { %2171 = vmatpush3.xpose.msk.msra.mxu1 %vm740_vm0, %v958_v40 }
 0x2e3   : > { %2172 = vmatprep.subr.msk.mxu1 %vm740_vm0, %v956_v29 }
 0x2e6   : > { %2173 = vmatpush3.xpose.msk.msra.mxu1 %vm740_vm0, %v956_v29 }
 0x2e7   : > { %2188 = vmatprep.subr.msk.mxu1 %vm740_vm0, %v1203_v35 }
 0x2e9   : > { %2175 = vmatmul.mubr.msk.f32.vlgmr.msra.gmra.mxu1 %vm740_vm0, %v950_v37 }
 0x2ea   : > { %2189 = vmatpush3.xpose.msk.msra.mxu1 %vm740_vm0, %v1203_v35  ;;  %2196 = vmatprep.mubr.msk.f32.mxu1 %vm740_vm0, %v1189_v42 }
 0x2eb   : > { %2190 = vmatprep.subr.msk.mxu1 %vm740_vm0, %v1201_v39 }
 0x2ee   : > { %2191 = vmatpush3.xpose.msk.msra.mxu1 %vm740_vm0, %v1201_v39 }
 0x2ef   : > { %2192 = vmatprep.subr.msk.mxu1 %vm740_vm0, %v1199_v41 }
 0x2f2   : > { %2193 = vmatpush3.xpose.msk.msra.mxu1 %vm740_vm0, %v1199_v41 }
 0x2f3   : > { %2194 = vmatprep.subr.msk.mxu1 %vm740_vm0, %v1197_v43 }
 0x2f6   : > { %2195 = vmatpush3.xpose.msk.msra.mxu1 %vm740_vm0, %v1197_v43 }
 0x2f7   : > { %2199 = vmatprep.subr.mxu1 %v1320_v46 }
 0x2f9   : > { %2197 = vmatmul.mubr.msk.f32.vlgmr.msra.gmra.mxu1 %vm740_vm0, %v1191_v44 }
 0x2fa   : > { %2200 = vmatpush3.msra.mxu1 %v1320_v46 }
 0x2fb   : > { %2201 = vmatprep.subr.mxu1 %v1318_v45 }
 0x2fc   : > { %2202 = vmatpush3.msra.mxu1 %v1318_v45 }
 0x2fd   : > { %2203 = vmatprep.subr.mxu1 %v1316_v47 }
 0x2fe   : > { %2204 = vmatpush3.msra.mxu1 %v1316_v47 }
 0x399   : > { %v3028_v49 = vpop.f32.mrf.mxu1 }
 0x39b   : > { %v3030_v50 = vpop.f32.mrf.mxu1 }
 0x3a9   : > { %v3032_v51 = vpop.f32.mrf.mxu1 }
 0x3aa   : > { %v1053_v59 = vsel %vm740_vm0, %v3032_v51, -inf }
 0x3ab   : > { %v1041_v53 = vpop.f32.mrf.mxu1 }
 0x3ac   : > { %v1050_v58 = vsel %vm740_vm0, %v1041_v53, -inf }
 0x3b9   : > { %v2198_v54 = vpop.f32.mrf.mxu1 }
 0x3ba   : > { %v1294_v55 = vsel %vm740_vm0, %v2198_v54, -inf }
 0x3bb   : > { %1295 = vmax.xlane.f32.xlu0 %v1294_v55  ;;  %v1282_v56 = vpop.f32.mrf.mxu1 }
 0x3bc   : > { %v1291_v57 = vsel %vm740_vm0, %v1282_v56, -inf }
 0x3bd   : > { %1292 = vmax.xlane.f32.xlu1 %v1291_v57 }
 0x3ce   : > { %1443 = vrot.lane.b32.xlu1 %v2922_v10, %s2651_s25 }
 0x3d1   : > { %1313 = vrot.lane.b32.xlu0 %v2954_v18, %s2650_s29 }
 0x3d2   : > { %1439 = vrot.lane.b32.xlu1 %v2942_v15, %s2651_s25 }
 0x3d5   : > { %1441 = vrot.lane.b32.xlu0 %v2926_v12, %s2651_s25 }
 0x3d6   : > { %1429 = vrot.lane.b32.xlu1 %v2920_v8, %s2651_s25 }
 0x3d9   : > { %1437 = vrot.lane.b32.xlu0 %v2952_v17, %s2651_s25 }
 0x3dd   : > { %1431 = vrot.lane.b32.xlu0 %v2972_v20, %s2651_s25 }
 0x3fa   : > { %1051 = vmax.xlane.f32.xlu1 %v1050_v58 }
 0x3fc   : > { %1054 = vmax.xlane.f32.xlu0 %v1053_v59 }
 0x40b   : > { %1076 = vrot.lane.b32.xlu1 %v2936_v14, %s2649_s20 }
 0x40f   : > { %1074 = vrot.lane.b32.xlu1 %v2944_v16, %s2649_s20 }
 0x412   : > { %1078 = vrot.lane.b32.xlu0 %v2928_v13, %s2649_s20 }
 0x413   : > { %1560 = vrot.lane.b32.xlu1 %v2928_v13, %s2651_s25 }
 0x416   : > { %1072 = vrot.lane.b32.xlu0 %v2954_v18, %s2649_s20 }
 0x41a   : > { %1558 = vrot.lane.b32.xlu0 %v2936_v14, %s2651_s25 }
 0x444   : > { %v1296_v60 = vpop.xlane.xlu0 %1295 }
 0x445   : > { %v1298_v61 = vsub.f32 %v2198_v54, %v1296_v60  ;;  %v846_v54 = vsel %vm740_vm0, %v3001_v36, 0.0 }
 0x446   : > { %v1293_v62 = vpop.xlane.xlu1 %1292 }
 0x447   : > { %v1297_v63 = vsub.f32 %v1282_v56, %v1293_v62  ;;  %v1301_v1 = vmul.f32 1.442695, %v1298_v61 }
 0x448   : > { %v1314_v2 = vpop.permute.xlu0 %1313 }
 0x449   : > { %v1299_v0 = vmul.f32 1.442695, %v1297_v63  ;;  %2205 = vmatprep.subr.mxu1 %v1314_v2 }
 0x44a   : > { %v1444_v3 = vpop.permute.xlu1 %1443  ;;  %2206 = vmatpush3.msra.mxu1 %v1314_v2 }
 0x44b   : > { %2379 = vpow2.f32 %v1299_v0  ;;  %2210 = vmatprep.subr.msk.mxu1 %vm740_vm0, %v1444_v3 }
 0x44c   : > { %2381 = vpow2.f32 %v1301_v1  ;;  %v1442_v8 = vpop.permute.xlu0 %1441 }
 0x44e   : > { %v1440_v4 = vpop.permute.xlu1 %1439 }
 0x450   : > { %v1438_v9 = vpop.permute.xlu0 %1437 }
 0x452   : > { %v1430_v7 = vpop.permute.xlu1 %1429 }
 0x454   : > { %v1432_v10 = vpop.permute.xlu0 %1431 }
 0x458   : > { %v3066_v5 = vpop.eup %2379 }
 0x459   : > { %v2382_v6 = vpop.eup %2381  ;;  %2207 = vmatprep.mubr.msk.f32.mxu1 %vm740_vm0, %v3066_v5  ;;  %v1303_v37 = vsel %vm740_vm0, %v3066_v5, 0.0  ;;  %v1677_v5 = vld [vmem:[#allocation12 + $0x68] sm:$0xff] }
 0x45a   : > { %2208 = vmatmul.mubr.msk.f32.vlgmr.msra.gmra.mxu1 %vm740_vm0, %v2382_v6  ;;  %v1306_v35 = vsel %vm740_vm0, %v2382_v6, 0.0  ;;  %v1676_v6 = vld [vmem:[#allocation12 + $0x60] sm:$0xff] }
 0x45b   : > { %2211 = vmatpush3.xpose.msk.msra.mxu1 %vm740_vm0, %v1444_v3  ;;  %2218 = vmatprep.mubr.msk.f32.mxu1 %vm740_vm0, %v1430_v7  ;;  %v1679_v3 = vld [vmem:[#allocation12 + $0x78] sm:$0xff] }
 0x45c   : > { %2212 = vmatprep.subr.msk.mxu1 %vm740_vm0, %v1442_v8  ;;  %v1675_v7 = vld [vmem:[#allocation12 + $0x58] sm:$0xff] }
 0x45f   : > { %2213 = vmatpush3.xpose.msk.msra.mxu1 %vm740_vm0, %v1442_v8  ;;  %v1674_v8 = vld [vmem:[#allocation12 + $0x50] sm:$0xff] }
 0x460   : > { %2214 = vmatprep.subr.msk.mxu1 %vm740_vm0, %v1440_v4 }
 0x463   : > { %2215 = vmatpush3.xpose.msk.msra.mxu1 %vm740_vm0, %v1440_v4  ;;  %v1678_v4 = vld [vmem:[#allocation12 + $0x70] sm:$0xff] }
 0x464   : > { %2216 = vmatprep.subr.msk.mxu1 %vm740_vm0, %v1438_v9 }
 0x467   : > { %2217 = vmatpush3.xpose.msk.msra.mxu1 %vm740_vm0, %v1438_v9  ;;  %v1673_v9 = vld [vmem:[#allocation12 + $0x48] sm:$0xff] }
 0x46a   : > { %2219 = vmatmul.mubr.msk.f32.vlgmr.msra.gmra.mxu1 %vm740_vm0, %v1432_v10  ;;  %v1672_v10 = vld [vmem:[#allocation12 + $0x40] sm:$0xff] }
 0x483   : > { %v1052_v11 = vpop.xlane.xlu1 %1051 }
 0x484   : > { %v1056_v12 = vsub.f32 %v1041_v53, %v1052_v11  ;;  %v849_v53 = vsel %vm740_vm0, %v3005_v38, 0.0  ;;  %v1671_v11 = vld [vmem:[#allocation12 + $0x38] sm:$0xff] }
 0x485   : > { %v1055_v13 = vpop.xlane.xlu0 %1054 }
 0x486   : > { %v1058_v14 = vmul.f32 1.442695, %v1056_v12  ;;  %v1057_v15 = vsub.f32 %v3032_v51, %v1055_v13  ;;  %v1670_v12 = vld [vmem:[#allocation12 + $0x30] sm:$0xff]  ;;  %v1669_v13 = vld [vmem:[#allocation12 + $0x28] sm:$0xff] }
 0x487   : > { %v1077_v17 = vpop.permute.xlu1 %1076 }
 0x488   : > { %2383 = vpow2.f32 %v1058_v14  ;;  %v1060_v19 = vmul.f32 1.442695, %v1057_v15 }
 0x489   : > { %v1079_v20 = vpop.permute.xlu0 %1078 }
 0x48a   : > { %2385 = vpow2.f32 %v1060_v19  ;;  %2177 = vmatprep.subr.mxu0 %v1079_v20 }
 0x48b   : > { %v1075_v21 = vpop.permute.xlu1 %1074  ;;  %2178 = vmatpush3.msra.mxu0 %v1079_v20 }
 0x48c   : > { %2179 = vmatprep.subr.mxu0 %v1077_v17 }
 0x48d   : > { %2180 = vmatpush3.msra.mxu0 %v1077_v17  ;;  %v1073_v22 = vpop.permute.xlu0 %1072 }
 0x48e   : > { %2181 = vmatprep.subr.mxu0 %v1075_v21 }
 0x48f   : > { %2182 = vmatpush3.msra.mxu0 %v1075_v21  ;;  %v1561_v23 = vpop.permute.xlu1 %1560 }
 0x490   : > { %2183 = vmatprep.subr.mxu0 %v1073_v22 }
 0x491   : > { %2184 = vmatpush3.msra.mxu0 %v1073_v22  ;;  %v1559_v26 = vpop.permute.xlu0 %1558 }
 0x492   : > { %2221 = vmatprep.subr.mxu0 %v1561_v23 }
 0x495   : > { %v2384_v24 = vpop.eup %2383 }
 0x496   : > { %2185 = vmatprep.mubr.msk.f32.mxu0 %vm740_vm0, %v2384_v24  ;;  %v1062_v33 = vsel %vm740_vm0, %v2384_v24, 0.0 }
 0x497   : > { %v2386_v25 = vpop.eup %2385 }
 0x498   : > { %2186 = vmatmul.mubr.msk.f32.vlgmr.msra.gmra.mxu0 %vm740_vm0, %v2386_v25  ;;  %v1065_v34 = vsel %vm740_vm0, %v2386_v25, 0.0 }
 0x499   : > { %2222 = vmatpush3.msra.mxu0 %v1561_v23 }
 0x49a   : > { %2223 = vmatprep.subr.mxu0 %v1559_v26 }
 0x49b   : > { %2224 = vmatpush3.msra.mxu0 %v1559_v26 }
 0x51a   : > { %v2209_v27 = vpop.f32.mrf.mxu1 }
 0x51c   : > { %v3083_v28 = vpop.f32.mrf.mxu1 }
 0x52a   : > { %v2220_v29 = vpop.f32.mrf.mxu1 }
 0x52b   : > { %v1535_v30 = vsel %vm740_vm0, %v2220_v29, -inf }
 0x52c   : > { %1536 = vmax.xlane.f32.xlu1 %v1535_v30  ;;  %v1523_v31 = vpop.f32.mrf.mxu1  ;;  %v1664_v30 = vld [vmem:[#allocation12] sm:$0xff] }
 0x52d   : > { %v1532_v32 = vsel %vm740_vm0, %v1523_v31, -inf }
 0x52e   : > { %1533 = vmax.xlane.f32.xlu0 %v1532_v32 }
 0x53d   : > { %1556 = vrot.lane.b32.xlu1 %v2944_v16, %s2651_s25 }
 0x544   : > { %1554 = vrot.lane.b32.xlu0 %v2954_v18, %s2651_s25 }
 0x558   : > { %v2187_v59 = vpop.f32.mrf.mxu0 }
 0x55a   : > { %v1156_v61 = vpop.f32.mrf.mxu0 }
 0x561   : > { %1063 = vadd.xlane.f32.xlu1 %v1062_v33 }
 0x563   : > { %1066 = vadd.xlane.f32.xlu0 %v1065_v34 }
 0x565   : > { %1307 = vadd.xlane.f32.xlu1 %v1306_v35 }
 0x567   : > { %1304 = vadd.xlane.f32.xlu0 %v1303_v37 }
 0x5b5   : > { %v1537_v39 = vpop.xlane.xlu1 %1536 }
 0x5b6   : > { %v1539_v40 = vsub.f32 %v2220_v29, %v1537_v39  ;;  %v1665_v29 = vld [vmem:[#allocation12 + $0x8] sm:$0xff] }
 0x5b7   : > { %v1534_v41 = vpop.xlane.xlu0 %1533 }
 0x5b8   : > { %v1542_v16 = vmul.f32 1.442695, %v1539_v40  ;;  %v1538_v42 = vsub.f32 %v1523_v31, %v1534_v41 }
 0x5b9   : > { %v1557_v43 = vpop.permute.xlu1 %1556 }
 0x5ba   : > { %2387 = vpow2.f32 %v1542_v16  ;;  %v1540_v18 = vmul.f32 1.442695, %v1538_v42  ;;  %2225 = vmatprep.subr.mxu0 %v1557_v43  ;;  %v2014_v42 = vld [vmem:[%s3189_s7] ss:$0 sm:$0xff] }
 0x5bb   : > { %2226 = vmatpush3.msra.mxu0 %v1557_v43  ;;  %v1555_v44 = vpop.permute.xlu0 %1554 }
 0x5bc   : > { %2389 = vpow2.f32 %v1540_v18  ;;  %2227 = vmatprep.subr.mxu0 %v1555_v44 }
 0x5bd   : > { %2228 = vmatpush3.msra.mxu0 %v1555_v44 }
 0x5be   : > { %2232 = vmatprep.subr.mxu0 %v1679_v3 }
 0x5c7   : > { %v2388_v45 = vpop.eup %2387 }
 0x5c8   : > { %v1547_v46 = vsel %vm740_vm0, %v2388_v45, 0.0 }
 0x5c9   : > { %v2390_v47 = vpop.eup %2389  ;;  %1548 = vadd.xlane.f32.xlu1 %v1547_v46 }
 0x5ca   : > { %2229 = vmatprep.mubr.msk.f32.mxu0 %vm740_vm0, %v2390_v47  ;;  %v1544_v51 = vsel %vm740_vm0, %v2390_v47, 0.0 }
 0x5cb   : > { %1545 = vadd.xlane.f32.xlu0 %v1544_v51  ;;  %2230 = vmatmul.mubr.msk.f32.vlgmr.msra.gmra.mxu0 %vm740_vm0, %v2388_v45 }
 0x5cc   : > { %2233 = vmatpush3.msra.mxu0 %v1679_v3 }
 0x5cd   : > { %850 = vadd.xlane.f32.xlu1 %v849_v53  ;;  %2234 = vmatprep.subr.mxu0 %v1678_v4 }
 0x5ce   : > { %2235 = vmatpush3.msra.mxu0 %v1678_v4 }
 0x5cf   : > { %847 = vadd.xlane.f32.xlu0 %v846_v54  ;;  %2236 = vmatprep.subr.mxu0 %v1677_v5 }
 0x5d0   : > { %2237 = vmatpush3.msra.mxu0 %v1677_v5 }
 0x5d1   : > { %2238 = vmatprep.subr.mxu0 %v1676_v6 }
 0x5d2   : > { %2239 = vmatpush3.msra.mxu0 %v1676_v6 }
 0x5d3   : > { %2240 = vmatprep.subr.mxu0 %v1675_v7 }
 0x5d4   : > { %2241 = vmatpush3.msra.mxu0 %v1675_v7 }
 0x5d5   : > { %2242 = vmatprep.subr.mxu0 %v1674_v8 }
 0x5d6   : > { %2243 = vmatpush3.msra.mxu0 %v1674_v8 }
 0x5d7   : > { %2244 = vmatprep.subr.mxu0 %v1673_v9 }
 0x5d8   : > { %2245 = vmatpush3.msra.mxu0 %v1673_v9 }
 0x5d9   : > { %2246 = vmatprep.subr.mxu0 %v1672_v10 }
 0x5da   : > { %2247 = vmatpush3.msra.mxu0 %v1672_v10 }
 0x5db   : > { %2248 = vmatprep.subr.mxu0 %v1671_v11 }
 0x5dc   : > { %2249 = vmatpush3.msra.mxu0 %v1671_v11 }
 0x5dd   : > { %2250 = vmatprep.subr.mxu0 %v1670_v12 }
 0x5de   : > { %2251 = vmatpush3.msra.mxu0 %v1670_v12 }
 0x5df   : > { %2252 = vmatprep.subr.mxu0 %v1669_v13 }
 0x5e0   : > { %2253 = vmatpush3.msra.mxu0 %v1669_v13 }
 0x5ea   : > { %v1064_v55 = vpop.xlane.xlu1 %1063 }
 0x5eb   : > { %2391 = vrcp.f32 %v1064_v55 }
 0x5ec   : > { %v1067_v56 = vpop.xlane.xlu0 %1066 }
 0x5ed   : > { %2393 = vrcp.f32 %v1067_v56 }
 0x5ee   : > { %v1308_v57 = vpop.xlane.xlu1 %1307 }
 0x5ef   : > { %2395 = vrcp.f32 %v1308_v57 }
 0x5f0   : > { %v1305_v58 = vpop.xlane.xlu0 %1304 }
 0x5f1   : > { %2397 = vrcp.f32 %v1305_v58 }
 0x5f8   : > { %v2392_v60 = vpop.eup %2391 }
 0x5f9   : > { %v1167_v62 = vmul.f32 %v2392_v60, %v1156_v61 }
 0x5fa   : > { %v2394_v63 = vpop.eup %2393 }
 0x5fb   : > { %1171 = vrot.lane.b32.xlu0 %v1167_v62, %s2651_s25  ;;  %v1168_v38 = vmul.f32 %v2394_v63, %v2187_v59 }
 0x5fc   : > { %v2396_v1 = vpop.eup %2395 }
 0x5fd   : > { %1173 = vrot.lane.b32.xlu1 %v1168_v38, %s2651_s25  ;;  %v1409_v36 = vmul.f32 %v2396_v1, %v2209_v27  ;;  %v2015_v1 = vld [vmem:[%s3190_s8] ss:$0 sm:$0xff] }
 0x5fe   : > { %v2398_v2 = vpop.eup %2397 }
 0x5ff   : > { %1414 = vrot.lane.b32.xlu0 %v1409_v36, %s2650_s29  ;;  %v1408_v0 = vmul.f32 %v2398_v2, %v3083_v28  ;;  %v1666_v28 = vld [vmem:[#allocation12 + $0x10] sm:$0xff] }
 0x601   : > { %1412 = vrot.lane.b32.xlu1 %v1408_v0, %s2650_s29  ;;  %v2016_v0 = vld [vmem:[%s3191_s9] ss:$0 sm:$0xff] }
 0x652   : > { %v1549_v14 = vpop.xlane.xlu1 %1548 }
 0x654   : > { %v1546_v15 = vpop.xlane.xlu0 %1545 }
 0x656   : > { %v851_v17 = vpop.xlane.xlu1 %850 }
 0x657   : > { %2399 = vrcp.f32 %v851_v17 }
 0x658   : > { %v848_v19 = vpop.xlane.xlu0 %847 }
 0x659   : > { %2401 = vrcp.f32 %v848_v19 }
 0x65a   : > { %2403 = vrcp.f32 %v1549_v14 }
 0x65b   : > { %2405 = vrcp.f32 %v1546_v15 }
 0x664   : > { %v2400_v20 = vpop.eup %2399 }
 0x665   : > { %v936_v21 = vmul.f32 %v2400_v20, %v3028_v49  ;;  %v1668_v49 = vld [vmem:[#allocation12 + $0x20] sm:$0xff] }
 0x666   : > { %v2402_v22 = vpop.eup %2401  ;;  %2254 = vmatprep.subr.mxu0 %v1668_v49 }
 0x667   : > { %v935_v23 = vmul.f32 %v2402_v22, %v3030_v50  ;;  %938 = vst.msk [vmem:[#allocation3 + $0x8] sm:$0xff] %vm740_vm0, %v936_v21  ;;  %2255 = vmatpush3.msra.mxu0 %v1668_v49  ;;  %v1667_v50 = vld [vmem:[#allocation12 + $0x18] sm:$0xff]  ;;  %v2404_v31 = vpop.eup %2403 }
 0x668   : > { %2256 = vmatprep.subr.mxu0 %v1667_v50  ;;  %v2406_v34 = vpop.eup %2405 }
 0x669   : > { %937 = vst.msk [vmem:[#allocation3] sm:$0xff] %vm740_vm0, %v935_v23  ;;  %2257 = vmatpush3.msra.mxu0 %v1667_v50 }
 0x66a   : > { %2258 = vmatprep.subr.mxu0 %v1666_v28 }
 0x66b   : > { %2259 = vmatpush3.msra.mxu0 %v1666_v28 }
 0x66c   : > { %2260 = vmatprep.subr.mxu0 %v1665_v29 }
 0x66d   : > { %v1172_v24 = vpop.permute.xlu0 %1171  ;;  %2261 = vmatpush3.msra.mxu0 %v1665_v29 }
 0x66e   : > { %1178 = vst.msk [vmem:[#allocation3] sm:$0xff] %vm1177_vm1, %v1172_v24  ;;  %2262 = vmatprep.subr.mxu0 %v1664_v30 }
 0x66f   : > { %v1174_v25 = vpop.permute.xlu1 %1173  ;;  %2263 = vmatpush3.msra.mxu0 %v1664_v30 }
 0x670   : > { %1179 = vst.msk [vmem:[#allocation3 + $0x8] sm:$0xff] %vm1177_vm1, %v1174_v25 }
 0x671   : > { %v1415_v26 = vpop.permute.xlu0 %1414 }
 0x672   : > { %1420 = vst.msk [vmem:[#allocation3 + $0x8] sm:$0xff] %vm1418_vm2, %v1415_v26 }
 0x673   : > { %v1413_v27 = vpop.permute.xlu1 %1412 }
 0x674   : > { %1419 = vst.msk [vmem:[#allocation3] sm:$0xff] %vm1418_vm2, %v1413_v27 }
 0x68b   : > { %v2231_v32 = vpop.f32.mrf.mxu0 }
 0x68c   : > { %v1650_v33 = vmul.f32 %v2404_v31, %v2231_v32 }
 0x68d   : > { %v1638_v35 = vpop.f32.mrf.mxu0 }
 0x68e   : > { %v1649_v37 = vmul.f32 %v2406_v34, %v1638_v35  ;;  %1655 = vrot.lane.b32.xlu0 %v1650_v33, %s2649_s20 }
 0x690   : > { %1653 = vrot.lane.b32.xlu1 %v1649_v37, %s2649_s20 }
 0x700   : > { %v1656_v39 = vpop.permute.xlu0 %1655 }
 0x701   : > { %1661 = vst.msk [vmem:[#allocation3 + $0x8] sm:$0xff] %vm1659_vm3, %v1656_v39 }
 0x702   : > { %v1654_v40 = vpop.permute.xlu1 %1653 }
 0x703   : > { %1660 = vst.msk [vmem:[#allocation3] sm:$0xff] %vm1659_vm3, %v1654_v40 }
 0x708   : > { %v1663_v16 = vld [vmem:[#allocation3 + $0x8] sm:$0xff] }
 0x70a   : > { %v1662_v41 = vld [vmem:[#allocation3] sm:$0xff] }
 0x70b   : > { %2264 = vmatprep.mubr.f32.mxu0 %v1662_v41 }
 0x70c   : > { %2265 = vmatmul.mubr.f32.vlgmr.msra.gmra.mxu0 %v1663_v16 }
 0x7cc   : > { %v2266_v43 = vpop.f32.mrf.mxu0 }
 0x7cd   : > { %v1759_v18 = vadd.f32 %v2266_v43, %v2014_v42 }
 0x7ce   : > { %v1753_v44 = vpop.f32.mrf.mxu0 }
 0x7cf   : > { %v1754_v45 = vadd.f32 %v2014_v42, %v1753_v44  ;;  %v1763_v46 = vadd.f32 %v1759_v18, %v2907_v52 }
 0x7d1   : > { %1766 = vadd.xlane.f32.xlu0 %v1763_v46  ;;  %v1762_v47 = vadd.f32 %v1754_v45, %v2901_v48 }
 0x7d3   : > { %1764 = vadd.xlane.f32.xlu1 %v1762_v47 }
 0x85a   : > { %v1767_v51 = vpop.xlane.xlu0 %1766 }
 0x85b   : > { %v1770_v53 = vmul.f32 0.0078125, %v1767_v51 }
 0x85c   : > { %v1765_v54 = vpop.xlane.xlu1 %1764 }
 0x85d   : > { %v1772_v55 = vsub.f32 %v1763_v46, %v1770_v53  ;;  %v1769_v56 = vmul.f32 0.0078125, %v1765_v54 }
 0x85f   : > { %v1771_v57 = vsub.f32 %v1762_v47, %v1769_v56  ;;  %v1774_v58 = vmul.f32 %v1772_v55, %v1772_v55 }
 0x861   : > { %1777 = vadd.xlane.f32.xlu1 %v1774_v58  ;;  %v1773_v59 = vmul.f32 %v1771_v57, %v1771_v57 }
 0x863   : > { %1775 = vadd.xlane.f32.xlu0 %v1773_v59 }
 0x8ea   : > { %v1778_v60 = vpop.xlane.xlu1 %1777 }
 0x8eb   : > { %v1780_v61 = vmul.f32 0.0078125, %v1778_v60 }
 0x8ec   : > { %v1776_v62 = vpop.xlane.xlu0 %1775 }
 0x8ed   : > { %v1782_v52 = vadd.f32 1e-05, %v1780_v61  ;;  %v1779_v63 = vmul.f32 0.0078125, %v1776_v62 }
 0x8ef   : > { %2407 = vrsqrt.f32 %v1782_v52  ;;  %v1781_v48 = vadd.f32 1e-05, %v1779_v63 }
 0x8f1   : > { %2409 = vrsqrt.f32 %v1781_v48 }
 0x8fc   : > { %v2408_v38 = vpop.eup %2407 }
 0x8fd   : > { %v1786_v36 = vmul.f32 %v2408_v38, %v1772_v55 }
 0x8fe   : > { %v2410_v2 = vpop.eup %2409 }
 0x8ff   : > { %v1795_v3 = vmul.f32 %v2015_v1, %v1786_v36  ;;  %v1785_v4 = vmul.f32 %v2410_v2, %v1771_v57 }
 0x901   : > { %v1804_v5 = vadd.f32 %v2016_v0, %v1795_v3  ;;  %v1794_v6 = vmul.f32 %v2015_v1, %v1785_v4 }
 0x903   : > { %v1803_v7 = vadd.f32 %v2016_v0, %v1794_v6  ;;  %1806 = vst [vmem:[%s478_s18 + $0x8] sm:$0xff] %v1804_v5 }
 0x905   : > { %1805 = vst [vmem:[%s478_s18] sm:$0xff] %v1803_v7 }
 0x906   : > { %2558 = shalt.err (!%p2555_p12)
}
 0x907   : > { %s2559_s20 = scalar_lea.hbm %s3132_s19, 256  ;;  %s2563_s12 = scalar_lea.hbm %s3232_s11, 512 }
 0x908   : > { %p2560_p13 = scmp.ne.s32.totalorder %s3132_s19, %s2559_s20  ;;  %p2564_p11 = scmp.lt.s32.totalorder %s3132_s19, %s3232_s11 }
 0x909   : > { %p2565_p3 = scmp.lt.s32.totalorder %s2563_s12, %s2559_s20 }
 0x90a   : > { %p2561_p0 = pnand %p2560_p13, %p2818_p5 }
 0x90b   : > { %p2566_p1 = por %p2565_p3, %p2564_p11 }
 0x90c   : > { %p2562_p10 = pneg %p2561_p0 }
 0x90e   : > { %p2567_p4 = pnand %p2566_p1, %p2562_p10 }
 0x910   : > { %2570 = shalt.err (!%p2567_p4)
}
 0x911   : > { %s2653_s2 = smov 128   ;;  %s2654_s26 = smov 8  }
 0x912   : > { %2283 = dma.vmem_to_hbm [thread:$0]  (%p2818_p5), %s3134_s6, 256, %s3132_s19, %s1808_s21, %s2653_s2, %s2653_s2, %s2654_s26  }
 0x913 PF: > { %s3233_s30 = sld [smem:[#allocation19_spill]] }
 0x914   : > { %s3235_s18 = sld [smem:[#allocation21_spill]] }
 0x919   : > { %s1838_s15 = sand.u32 1, %s3233_s30  }
 0x91a   : > { %p3236_p8 = scmp.ge.s32.totalorder %s3235_s18, 2  ;;  %s1839_s23 = scalar_lea.sflag [#allocation6], %s1838_s15 }
 0x91c   : > { %p2303_p2 = pnand %p3236_p8, %p2755_p6 }
 0x91e   : > { %p2304_p7 = pneg %p2303_p2 }
 0x920   : > { %2612 = dma.done.wait (%p2304_p7), %s1839_s23, 256  }
 0x921   : > { %2614 = vsyncadd (%p2304_p7), %s1839_s23, 4294967040  ;;  %s30_s18 = sadd.s32 1, %s3235_s18   ;;  %s3237_s16 = sld [smem:[#allocation20_spill]] }
 0x922   : > { %p27_p9 = scmp.ge.s32.totalorder %s30_s18, 4   ;;  %s3238_s15 = sld [smem:[#allocation25_spill]] }
 0x923   : > { %s3239_s0 = sld [smem:[#allocation23_spill]]  ;;  %s3240_s13 = smov %s2621_s14 }
 0x925   :  { %29 = sbr.rel (!%p27_p9) target bundleno = 15 (0xf), region = 134 }
 0x927   : > { %s3241_s14 = smov %s3237_s16  ;;  %s3242_s16 = smov %s2633_s17 }
 0x929   : > { %s3243_s17 = smov %s3239_s0 }
 0x92a   :  { %1844 = vsyncpa [#allocation5], 1 }
 0x92b   :  { %1846 = vsyncpa [#allocation5 + $0x1], 1 }
 0x92c   :  { %1847 = vsyncpa [#allocation8], 1 }
 0x92d   :  { %1849 = vsyncpa [#allocation8 + $0x1], 1 }
 0x92e   :  { %1850 = vsyncpa [#allocation11], 1 }
 0x92f   :  { %1851 = vsyncpa [#allocation6], 1 }
 0x930   :  { %1853 = vsyncpa [#allocation6 + $0x1], 1 }

</bundles_post_ra>
